<compile_context>
chip_gen: v7x
topology: tpu7x:2x2x1
jax: 0.10.0
libtpu: 0.0.40
codegen_flags: <defaults>
</compile_context>

<pallas_src>
import jax
import jax.numpy as jnp
from jax import lax
from jax.experimental import pallas as pl
from jax.experimental.pallas import tpu as pltpu


CHUNK_ROWS = 16  # rows (sublanes) per inner compute chunk: 16 x 128 = 2048 samples

# Flat SMEM parameter layout (f32), PyTorch [out, in] weight layout:
IDX_W1 = 0    # w1[k, f] at IDX_W1 + 2*k + f   (16*2)
IDX_B1 = 32   # b1[k]    at IDX_B1 + k         (16)
IDX_W2 = 48   # w2[j, k] at IDX_W2 + 16*j + k  (8*16)
IDX_B2 = 176  # b2[j]    at IDX_B2 + j         (8)
IDX_W3 = 184  # w3[0, j] at IDX_W3 + j         (8)
IDX_B3 = 192  # b3[0]
N_PARAMS = 193


def mlp_kernel(p_ref, x_ref, o_ref):
    """p_ref: SMEM f32[193]; x_ref: VMEM [2, rt, 128]; o_ref: VMEM [rt, 128]."""
    rt = o_ref.shape[0]
    num_chunks = rt // CHUNK_ROWS  # static

    def chunk(c, carry):
        r0 = pl.multiple_of(c * CHUNK_ROWS, CHUNK_ROWS)
        x0 = x_ref[0, pl.ds(r0, CHUNK_ROWS), :]   # [CR, 128]  feature 0
        x1 = x_ref[1, pl.ds(r0, CHUNK_ROWS), :]   # [CR, 128]  feature 1

        # Fused Linear(2,16)+ReLU and Linear(16,8) accumulation: each hidden
        # plane h1_k is produced and immediately folded into the 8 layer-2
        # accumulators, keeping only ~11 activation planes live per chunk.
        acc = [jnp.zeros((CHUNK_ROWS, 128), jnp.float32) for _ in range(8)]
        for k in range(16):
            h1k = jnp.maximum(
                p_ref[IDX_W1 + 2 * k] * x0
                + p_ref[IDX_W1 + 2 * k + 1] * x1
                + p_ref[IDX_B1 + k],
                0.0)
            for j in range(8):
                acc[j] = acc[j] + p_ref[IDX_W2 + 16 * j + k] * h1k

        # Linear(16,8) bias + ReLU, then Linear(8,1) as an elementwise sum of
        # 8 channel planes (no cross-lane reduce), then Sigmoid (EUP).
        out = jnp.zeros((CHUNK_ROWS, 128), jnp.float32)
        for j in range(8):
            h2j = jnp.maximum(acc[j] + p_ref[IDX_B2 + j], 0.0)
            out = out + p_ref[IDX_W3 + j] * h2j
        out = jax.nn.sigmoid(out + p_ref[IDX_B3])
        o_ref[pl.ds(r0, CHUNK_ROWS), :] = out.astype(o_ref.dtype)
        return carry

    lax.fori_loop(0, num_chunks, chunk, 0)


def pack_params(params):
    """Flatten all six PyTorch-layout parameters into one f32 vector (for SMEM)."""
    w1, b1, w2, b2, w3, b3 = params
    return jnp.concatenate([
        w1.reshape(-1), b1.reshape(-1),
        w2.reshape(-1), b2.reshape(-1),
        w3.reshape(-1), b3.reshape(-1),
    ]).astype(jnp.float32)


def binary_moon_forward(x, params, *, target_rows_per_tile=512):
    """x: [N, 2] float32 -> [N, 1] float32 sigmoid probabilities."""
    n = x.shape[0]
    p = pack_params(params)

    # Batch on (sublane, lane): rows of 128 samples.
    rows = pl.cdiv(n, 128)
    # Grid steps: big tiles (amortize per-step overhead), but keep >= 2 steps
    # for medium/large batches so ("parallel",) can shard over 2 TensorCores.
    g = pl.cdiv(rows, target_rows_per_tile)
    if rows >= 2 * CHUNK_ROWS:
        g = max(g, 2)
    g = max(g, 1)
    rt = pl.cdiv(pl.cdiv(rows, g), CHUNK_ROWS) * CHUNK_ROWS   # rows per tile
    rows_pad = g * rt
    n_pad = rows_pad * 128

    # Single light relayout pass: [N, 2] -> [2, rows_pad, 128], zero padded.
    # TODO(synk): accept x pre-laid-out as [2, rows, 128] upstream to drop this
    # extra HBM pass entirely.
    xt = (jnp.zeros((2, n_pad), jnp.float32)
          .at[:, :n].set(x.T)
          .reshape(2, rows_pad, 128))

    out = pl.pallas_call(
        mlp_kernel,
        out_shape=jax.ShapeDtypeStruct((rows_pad, 128), jnp.float32),
        grid_spec=pl.GridSpec(
            grid=(g,),
            in_specs=[
                pl.BlockSpec(memory_space=pltpu.MemorySpace.SMEM),   # packed params
                pl.BlockSpec((2, rt, 128), lambda i: (0, i, 0)),     # x tile
            ],
            out_specs=pl.BlockSpec((rt, 128), lambda i: (i, 0)),     # lane-dense out
        ),
        compiler_params=pltpu.CompilerParams(
            dimension_semantics=("parallel",)),
    )(p, xt)

    return out.reshape(-1)[:n].reshape(n, 1)


def init_params(key):
    """Deterministic init matching nn.Linear defaults (PyTorch [out, in] layout)."""
    ks = jax.random.split(key, 6)

    def linear(kw, kb, fan_in, fan_out):
        bound = 1.0 / jnp.sqrt(fan_in)
        w = jax.random.uniform(kw, (fan_out, fan_in), jnp.float32, -bound, bound)
        b = jax.random.uniform(kb, (fan_out,), jnp.float32, -bound, bound)
        return w, b

    w1, b1 = linear(ks[0], ks[1], 2, 16)
    w2, b2 = linear(ks[2], ks[3], 16, 8)
    w3, b3 = linear(ks[4], ks[5], 8, 1)
    return (w1, b1, w2, b2, w3, b3)


def reference_forward(x, params):
    w1, b1, w2, b2, w3, b3 = params
    h1 = jnp.maximum(x @ w1.T + b1, 0.0)
    h2 = jnp.maximum(h1 @ w2.T + b2, 0.0)
    return jax.nn.sigmoid(h2 @ w3.T + b3)


if __name__ == "__main__":
    key = jax.random.PRNGKey(0)
    k_x, k_p = jax.random.split(key)

    batch = 200   # deliberately not a multiple of 128 -> exercises the padding path
    x = jax.random.normal(k_x, (batch, 2), jnp.float32)
    params = init_params(k_p)

    out = jax.block_until_ready(binary_moon_forward(x, params))
    ref = reference_forward(x, params)

    assert out.shape == (batch, 1)
    assert jnp.allclose(out, ref, atol=1e-5, rtol=1e-5), "mismatch vs reference"

    print("KERNEL_OK")
</pallas_src>

<mosaic_0001>
module attributes {stable_mosaic.version = 11 : i64} {
  func.func @mlp_kernel(%arg0: i32, %arg1: memref<193xf32, #tpu.memory_space<smem>>, %arg2: memref<2x16x128xf32, #tpu.memory_space<vmem>>, %arg3: memref<16x128xf32, #tpu.memory_space<vmem>>) attributes {dimension_semantics = [#tpu.dimension_semantics<parallel>], iteration_bounds = array<i64: 1>, scalar_prefetch = 0 : i64, scratch_operands = 0 : i64, tpu.core_type = #tpu.core_type<tc>, window_params = [{transform_indices = @transform_0, window_bounds = array<i64: 193>}, {transform_indices = @transform_1, window_bounds = array<i64: 2, 16, 128>}, {transform_indices = @transform_2, window_bounds = array<i64: 16, 128>}]} {
    %c0_i32 = arith.constant 0 : i32
    %c16_i32 = arith.constant 16 : i32
    %0 = arith.muli %c0_i32, %c16_i32 : i32
    %1 = tpu.assume_multiple %0, 16 : i32
    %c0 = arith.constant 0 : index
    %2 = arith.index_cast %1 : i32 to index
    %c0_0 = arith.constant 0 : index
    %3 = vector.load %arg2[%c0, %2, %c0_0] : memref<2x16x128xf32, #tpu.memory_space<vmem>>, vector<1x16x128xf32>
    %4 = vector.shape_cast %3 : vector<1x16x128xf32> to vector<16x128xf32>
    %c1 = arith.constant 1 : index
    %5 = arith.index_cast %1 : i32 to index
    %c0_1 = arith.constant 0 : index
    %6 = vector.load %arg2[%c1, %5, %c0_1] : memref<2x16x128xf32, #tpu.memory_space<vmem>>, vector<1x16x128xf32>
    %7 = vector.shape_cast %6 : vector<1x16x128xf32> to vector<16x128xf32>
    %cst = arith.constant 0.000000e+00 : f32
    %8 = vector.broadcast %cst : f32 to vector<16x128xf32>
    %cst_2 = arith.constant 0.000000e+00 : f32
    %9 = vector.broadcast %cst_2 : f32 to vector<16x128xf32>
    %cst_3 = arith.constant 0.000000e+00 : f32
    %10 = vector.broadcast %cst_3 : f32 to vector<16x128xf32>
    %cst_4 = arith.constant 0.000000e+00 : f32
    %11 = vector.broadcast %cst_4 : f32 to vector<16x128xf32>
    %cst_5 = arith.constant 0.000000e+00 : f32
    %12 = vector.broadcast %cst_5 : f32 to vector<16x128xf32>
    %cst_6 = arith.constant 0.000000e+00 : f32
    %13 = vector.broadcast %cst_6 : f32 to vector<16x128xf32>
    %cst_7 = arith.constant 0.000000e+00 : f32
    %14 = vector.broadcast %cst_7 : f32 to vector<16x128xf32>
    %cst_8 = arith.constant 0.000000e+00 : f32
    %15 = vector.broadcast %cst_8 : f32 to vector<16x128xf32>
    %c0_9 = arith.constant 0 : index
    %16 = memref.load %arg1[%c0_9] : memref<193xf32, #tpu.memory_space<smem>>
    %17 = vector.broadcast %16 : f32 to vector<16x128xf32>
    %18 = arith.mulf %17, %4 : vector<16x128xf32>
    %c1_10 = arith.constant 1 : index
    %19 = memref.load %arg1[%c1_10] : memref<193xf32, #tpu.memory_space<smem>>
    %20 = vector.broadcast %19 : f32 to vector<16x128xf32>
    %21 = arith.mulf %20, %7 : vector<16x128xf32>
    %22 = arith.addf %18, %21 : vector<16x128xf32>
    %c32 = arith.constant 32 : index
    %23 = memref.load %arg1[%c32] : memref<193xf32, #tpu.memory_space<smem>>
    %24 = vector.broadcast %23 : f32 to vector<16x128xf32>
    %25 = arith.addf %22, %24 : vector<16x128xf32>
    %cst_11 = arith.constant 0.000000e+00 : f32
    %26 = vector.broadcast %cst_11 : f32 to vector<16x128xf32>
    %27 = arith.maximumf %25, %26 : vector<16x128xf32>
    %c48 = arith.constant 48 : index
    %28 = memref.load %arg1[%c48] : memref<193xf32, #tpu.memory_space<smem>>
    %29 = vector.broadcast %28 : f32 to vector<16x128xf32>
    %30 = arith.mulf %29, %27 : vector<16x128xf32>
    %31 = arith.addf %8, %30 : vector<16x128xf32>
    %c64 = arith.constant 64 : index
    %32 = memref.load %arg1[%c64] : memref<193xf32, #tpu.memory_space<smem>>
    %33 = vector.broadcast %32 : f32 to vector<16x128xf32>
    %34 = arith.mulf %33, %27 : vector<16x128xf32>
    %35 = arith.addf %9, %34 : vector<16x128xf32>
    %c80 = arith.constant 80 : index
    %36 = memref.load %arg1[%c80] : memref<193xf32, #tpu.memory_space<smem>>
    %37 = vector.broadcast %36 : f32 to vector<16x128xf32>
    %38 = arith.mulf %37, %27 : vector<16x128xf32>
    %39 = arith.addf %10, %38 : vector<16x128xf32>
    %c96 = arith.constant 96 : index
    %40 = memref.load %arg1[%c96] : memref<193xf32, #tpu.memory_space<smem>>
    %41 = vector.broadcast %40 : f32 to vector<16x128xf32>
    %42 = arith.mulf %41, %27 : vector<16x128xf32>
    %43 = arith.addf %11, %42 : vector<16x128xf32>
    %c112 = arith.constant 112 : index
    %44 = memref.load %arg1[%c112] : memref<193xf32, #tpu.memory_space<smem>>
    %45 = vector.broadcast %44 : f32 to vector<16x128xf32>
    %46 = arith.mulf %45, %27 : vector<16x128xf32>
    %47 = arith.addf %12, %46 : vector<16x128xf32>
    %c128 = arith.constant 128 : index
    %48 = memref.load %arg1[%c128] : memref<193xf32, #tpu.memory_space<smem>>
    %49 = vector.broadcast %48 : f32 to vector<16x128xf32>
    %50 = arith.mulf %49, %27 : vector<16x128xf32>
    %51 = arith.addf %13, %50 : vector<16x128xf32>
    %c144 = arith.constant 144 : index
    %52 = memref.load %arg1[%c144] : memref<193xf32, #tpu.memory_space<smem>>
    %53 = vector.broadcast %52 : f32 to vector<16x128xf32>
    %54 = arith.mulf %53, %27 : vector<16x128xf32>
    %55 = arith.addf %14, %54 : vector<16x128xf32>
    %c160 = arith.constant 160 : index
    %56 = memref.load %arg1[%c160] : memref<193xf32, #tpu.memory_space<smem>>
    %57 = vector.broadcast %56 : f32 to vector<16x128xf32>
    %58 = arith.mulf %57, %27 : vector<16x128xf32>
    %59 = arith.addf %15, %58 : vector<16x128xf32>
    %c2 = arith.constant 2 : index
    %60 = memref.load %arg1[%c2] : memref<193xf32, #tpu.memory_space<smem>>
    %61 = vector.broadcast %60 : f32 to vector<16x128xf32>
    %62 = arith.mulf %61, %4 : vector<16x128xf32>
    %c3 = arith.constant 3 : index
    %63 = memref.load %arg1[%c3] : memref<193xf32, #tpu.memory_space<smem>>
    %64 = vector.broadcast %63 : f32 to vector<16x128xf32>
    %65 = arith.mulf %64, %7 : vector<16x128xf32>
    %66 = arith.addf %62, %65 : vector<16x128xf32>
    %c33 = arith.constant 33 : index
    %67 = memref.load %arg1[%c33] : memref<193xf32, #tpu.memory_space<smem>>
    %68 = vector.broadcast %67 : f32 to vector<16x128xf32>
    %69 = arith.addf %66, %68 : vector<16x128xf32>
    %cst_12 = arith.constant 0.000000e+00 : f32
    %70 = vector.broadcast %cst_12 : f32 to vector<16x128xf32>
    %71 = arith.maximumf %69, %70 : vector<16x128xf32>
    %c49 = arith.constant 49 : index
    %72 = memref.load %arg1[%c49] : memref<193xf32, #tpu.memory_space<smem>>
    %73 = vector.broadcast %72 : f32 to vector<16x128xf32>
    %74 = arith.mulf %73, %71 : vector<16x128xf32>
    %75 = arith.addf %31, %74 : vector<16x128xf32>
    %c65 = arith.constant 65 : index
    %76 = memref.load %arg1[%c65] : memref<193xf32, #tpu.memory_space<smem>>
    %77 = vector.broadcast %76 : f32 to vector<16x128xf32>
    %78 = arith.mulf %77, %71 : vector<16x128xf32>
    %79 = arith.addf %35, %78 : vector<16x128xf32>
    %c81 = arith.constant 81 : index
    %80 = memref.load %arg1[%c81] : memref<193xf32, #tpu.memory_space<smem>>
    %81 = vector.broadcast %80 : f32 to vector<16x128xf32>
    %82 = arith.mulf %81, %71 : vector<16x128xf32>
    %83 = arith.addf %39, %82 : vector<16x128xf32>
    %c97 = arith.constant 97 : index
    %84 = memref.load %arg1[%c97] : memref<193xf32, #tpu.memory_space<smem>>
    %85 = vector.broadcast %84 : f32 to vector<16x128xf32>
    %86 = arith.mulf %85, %71 : vector<16x128xf32>
    %87 = arith.addf %43, %86 : vector<16x128xf32>
    %c113 = arith.constant 113 : index
    %88 = memref.load %arg1[%c113] : memref<193xf32, #tpu.memory_space<smem>>
    %89 = vector.broadcast %88 : f32 to vector<16x128xf32>
    %90 = arith.mulf %89, %71 : vector<16x128xf32>
    %91 = arith.addf %47, %90 : vector<16x128xf32>
    %c129 = arith.constant 129 : index
    %92 = memref.load %arg1[%c129] : memref<193xf32, #tpu.memory_space<smem>>
    %93 = vector.broadcast %92 : f32 to vector<16x128xf32>
    %94 = arith.mulf %93, %71 : vector<16x128xf32>
    %95 = arith.addf %51, %94 : vector<16x128xf32>
    %c145 = arith.constant 145 : index
    %96 = memref.load %arg1[%c145] : memref<193xf32, #tpu.memory_space<smem>>
    %97 = vector.broadcast %96 : f32 to vector<16x128xf32>
    %98 = arith.mulf %97, %71 : vector<16x128xf32>
    %99 = arith.addf %55, %98 : vector<16x128xf32>
    %c161 = arith.constant 161 : index
    %100 = memref.load %arg1[%c161] : memref<193xf32, #tpu.memory_space<smem>>
    %101 = vector.broadcast %100 : f32 to vector<16x128xf32>
    %102 = arith.mulf %101, %71 : vector<16x128xf32>
    %103 = arith.addf %59, %102 : vector<16x128xf32>
    %c4 = arith.constant 4 : index
    %104 = memref.load %arg1[%c4] : memref<193xf32, #tpu.memory_space<smem>>
    %105 = vector.broadcast %104 : f32 to vector<16x128xf32>
    %106 = arith.mulf %105, %4 : vector<16x128xf32>
    %c5 = arith.constant 5 : index
    %107 = memref.load %arg1[%c5] : memref<193xf32, #tpu.memory_space<smem>>
    %108 = vector.broadcast %107 : f32 to vector<16x128xf32>
    %109 = arith.mulf %108, %7 : vector<16x128xf32>
    %110 = arith.addf %106, %109 : vector<16x128xf32>
    %c34 = arith.constant 34 : index
    %111 = memref.load %arg1[%c34] : memref<193xf32, #tpu.memory_space<smem>>
    %112 = vector.broadcast %111 : f32 to vector<16x128xf32>
    %113 = arith.addf %110, %112 : vector<16x128xf32>
    %cst_13 = arith.constant 0.000000e+00 : f32
    %114 = vector.broadcast %cst_13 : f32 to vector<16x128xf32>
    %115 = arith.maximumf %113, %114 : vector<16x128xf32>
    %c50 = arith.constant 50 : index
    %116 = memref.load %arg1[%c50] : memref<193xf32, #tpu.memory_space<smem>>
    %117 = vector.broadcast %116 : f32 to vector<16x128xf32>
    %118 = arith.mulf %117, %115 : vector<16x128xf32>
    %119 = arith.addf %75, %118 : vector<16x128xf32>
    %c66 = arith.constant 66 : index
    %120 = memref.load %arg1[%c66] : memref<193xf32, #tpu.memory_space<smem>>
    %121 = vector.broadcast %120 : f32 to vector<16x128xf32>
    %122 = arith.mulf %121, %115 : vector<16x128xf32>
    %123 = arith.addf %79, %122 : vector<16x128xf32>
    %c82 = arith.constant 82 : index
    %124 = memref.load %arg1[%c82] : memref<193xf32, #tpu.memory_space<smem>>
    %125 = vector.broadcast %124 : f32 to vector<16x128xf32>
    %126 = arith.mulf %125, %115 : vector<16x128xf32>
    %127 = arith.addf %83, %126 : vector<16x128xf32>
    %c98 = arith.constant 98 : index
    %128 = memref.load %arg1[%c98] : memref<193xf32, #tpu.memory_space<smem>>
    %129 = vector.broadcast %128 : f32 to vector<16x128xf32>
    %130 = arith.mulf %129, %115 : vector<16x128xf32>
    %131 = arith.addf %87, %130 : vector<16x128xf32>
    %c114 = arith.constant 114 : index
    %132 = memref.load %arg1[%c114] : memref<193xf32, #tpu.memory_space<smem>>
    %133 = vector.broadcast %132 : f32 to vector<16x128xf32>
    %134 = arith.mulf %133, %115 : vector<16x128xf32>
    %135 = arith.addf %91, %134 : vector<16x128xf32>
    %c130 = arith.constant 130 : index
    %136 = memref.load %arg1[%c130] : memref<193xf32, #tpu.memory_space<smem>>
    %137 = vector.broadcast %136 : f32 to vector<16x128xf32>
    %138 = arith.mulf %137, %115 : vector<16x128xf32>
    %139 = arith.addf %95, %138 : vector<16x128xf32>
    %c146 = arith.constant 146 : index
    %140 = memref.load %arg1[%c146] : memref<193xf32, #tpu.memory_space<smem>>
    %141 = vector.broadcast %140 : f32 to vector<16x128xf32>
    %142 = arith.mulf %141, %115 : vector<16x128xf32>
    %143 = arith.addf %99, %142 : vector<16x128xf32>
    %c162 = arith.constant 162 : index
    %144 = memref.load %arg1[%c162] : memref<193xf32, #tpu.memory_space<smem>>
    %145 = vector.broadcast %144 : f32 to vector<16x128xf32>
    %146 = arith.mulf %145, %115 : vector<16x128xf32>
    %147 = arith.addf %103, %146 : vector<16x128xf32>
    %c6 = arith.constant 6 : index
    %148 = memref.load %arg1[%c6] : memref<193xf32, #tpu.memory_space<smem>>
    %149 = vector.broadcast %148 : f32 to vector<16x128xf32>
    %150 = arith.mulf %149, %4 : vector<16x128xf32>
    %c7 = arith.constant 7 : index
    %151 = memref.load %arg1[%c7] : memref<193xf32, #tpu.memory_space<smem>>
    %152 = vector.broadcast %151 : f32 to vector<16x128xf32>
    %153 = arith.mulf %152, %7 : vector<16x128xf32>
    %154 = arith.addf %150, %153 : vector<16x128xf32>
    %c35 = arith.constant 35 : index
    %155 = memref.load %arg1[%c35] : memref<193xf32, #tpu.memory_space<smem>>
    %156 = vector.broadcast %155 : f32 to vector<16x128xf32>
    %157 = arith.addf %154, %156 : vector<16x128xf32>
    %cst_14 = arith.constant 0.000000e+00 : f32
    %158 = vector.broadcast %cst_14 : f32 to vector<16x128xf32>
    %159 = arith.maximumf %157, %158 : vector<16x128xf32>
    %c51 = arith.constant 51 : index
    %160 = memref.load %arg1[%c51] : memref<193xf32, #tpu.memory_space<smem>>
    %161 = vector.broadcast %160 : f32 to vector<16x128xf32>
    %162 = arith.mulf %161, %159 : vector<16x128xf32>
    %163 = arith.addf %119, %162 : vector<16x128xf32>
    %c67 = arith.constant 67 : index
    %164 = memref.load %arg1[%c67] : memref<193xf32, #tpu.memory_space<smem>>
    %165 = vector.broadcast %164 : f32 to vector<16x128xf32>
    %166 = arith.mulf %165, %159 : vector<16x128xf32>
    %167 = arith.addf %123, %166 : vector<16x128xf32>
    %c83 = arith.constant 83 : index
    %168 = memref.load %arg1[%c83] : memref<193xf32, #tpu.memory_space<smem>>
    %169 = vector.broadcast %168 : f32 to vector<16x128xf32>
    %170 = arith.mulf %169, %159 : vector<16x128xf32>
    %171 = arith.addf %127, %170 : vector<16x128xf32>
    %c99 = arith.constant 99 : index
    %172 = memref.load %arg1[%c99] : memref<193xf32, #tpu.memory_space<smem>>
    %173 = vector.broadcast %172 : f32 to vector<16x128xf32>
    %174 = arith.mulf %173, %159 : vector<16x128xf32>
    %175 = arith.addf %131, %174 : vector<16x128xf32>
    %c115 = arith.constant 115 : index
    %176 = memref.load %arg1[%c115] : memref<193xf32, #tpu.memory_space<smem>>
    %177 = vector.broadcast %176 : f32 to vector<16x128xf32>
    %178 = arith.mulf %177, %159 : vector<16x128xf32>
    %179 = arith.addf %135, %178 : vector<16x128xf32>
    %c131 = arith.constant 131 : index
    %180 = memref.load %arg1[%c131] : memref<193xf32, #tpu.memory_space<smem>>
    %181 = vector.broadcast %180 : f32 to vector<16x128xf32>
    %182 = arith.mulf %181, %159 : vector<16x128xf32>
    %183 = arith.addf %139, %182 : vector<16x128xf32>
    %c147 = arith.constant 147 : index
    %184 = memref.load %arg1[%c147] : memref<193xf32, #tpu.memory_space<smem>>
    %185 = vector.broadcast %184 : f32 to vector<16x128xf32>
    %186 = arith.mulf %185, %159 : vector<16x128xf32>
    %187 = arith.addf %143, %186 : vector<16x128xf32>
    %c163 = arith.constant 163 : index
    %188 = memref.load %arg1[%c163] : memref<193xf32, #tpu.memory_space<smem>>
    %189 = vector.broadcast %188 : f32 to vector<16x128xf32>
    %190 = arith.mulf %189, %159 : vector<16x128xf32>
    %191 = arith.addf %147, %190 : vector<16x128xf32>
    %c8 = arith.constant 8 : index
    %192 = memref.load %arg1[%c8] : memref<193xf32, #tpu.memory_space<smem>>
    %193 = vector.broadcast %192 : f32 to vector<16x128xf32>
    %194 = arith.mulf %193, %4 : vector<16x128xf32>
    %c9 = arith.constant 9 : index
    %195 = memref.load %arg1[%c9] : memref<193xf32, #tpu.memory_space<smem>>
    %196 = vector.broadcast %195 : f32 to vector<16x128xf32>
    %197 = arith.mulf %196, %7 : vector<16x128xf32>
    %198 = arith.addf %194, %197 : vector<16x128xf32>
    %c36 = arith.constant 36 : index
    %199 = memref.load %arg1[%c36] : memref<193xf32, #tpu.memory_space<smem>>
    %200 = vector.broadcast %199 : f32 to vector<16x128xf32>
    %201 = arith.addf %198, %200 : vector<16x128xf32>
    %cst_15 = arith.constant 0.000000e+00 : f32
    %202 = vector.broadcast %cst_15 : f32 to vector<16x128xf32>
    %203 = arith.maximumf %201, %202 : vector<16x128xf32>
    %c52 = arith.constant 52 : index
    %204 = memref.load %arg1[%c52] : memref<193xf32, #tpu.memory_space<smem>>
    %205 = vector.broadcast %204 : f32 to vector<16x128xf32>
    %206 = arith.mulf %205, %203 : vector<16x128xf32>
    %207 = arith.addf %163, %206 : vector<16x128xf32>
    %c68 = arith.constant 68 : index
    %208 = memref.load %arg1[%c68] : memref<193xf32, #tpu.memory_space<smem>>
    %209 = vector.broadcast %208 : f32 to vector<16x128xf32>
    %210 = arith.mulf %209, %203 : vector<16x128xf32>
    %211 = arith.addf %167, %210 : vector<16x128xf32>
    %c84 = arith.constant 84 : index
    %212 = memref.load %arg1[%c84] : memref<193xf32, #tpu.memory_space<smem>>
    %213 = vector.broadcast %212 : f32 to vector<16x128xf32>
    %214 = arith.mulf %213, %203 : vector<16x128xf32>
    %215 = arith.addf %171, %214 : vector<16x128xf32>
    %c100 = arith.constant 100 : index
    %216 = memref.load %arg1[%c100] : memref<193xf32, #tpu.memory_space<smem>>
    %217 = vector.broadcast %216 : f32 to vector<16x128xf32>
    %218 = arith.mulf %217, %203 : vector<16x128xf32>
    %219 = arith.addf %175, %218 : vector<16x128xf32>
    %c116 = arith.constant 116 : index
    %220 = memref.load %arg1[%c116] : memref<193xf32, #tpu.memory_space<smem>>
    %221 = vector.broadcast %220 : f32 to vector<16x128xf32>
    %222 = arith.mulf %221, %203 : vector<16x128xf32>
    %223 = arith.addf %179, %222 : vector<16x128xf32>
    %c132 = arith.constant 132 : index
    %224 = memref.load %arg1[%c132] : memref<193xf32, #tpu.memory_space<smem>>
    %225 = vector.broadcast %224 : f32 to vector<16x128xf32>
    %226 = arith.mulf %225, %203 : vector<16x128xf32>
    %227 = arith.addf %183, %226 : vector<16x128xf32>
    %c148 = arith.constant 148 : index
    %228 = memref.load %arg1[%c148] : memref<193xf32, #tpu.memory_space<smem>>
    %229 = vector.broadcast %228 : f32 to vector<16x128xf32>
    %230 = arith.mulf %229, %203 : vector<16x128xf32>
    %231 = arith.addf %187, %230 : vector<16x128xf32>
    %c164 = arith.constant 164 : index
    %232 = memref.load %arg1[%c164] : memref<193xf32, #tpu.memory_space<smem>>
    %233 = vector.broadcast %232 : f32 to vector<16x128xf32>
    %234 = arith.mulf %233, %203 : vector<16x128xf32>
    %235 = arith.addf %191, %234 : vector<16x128xf32>
    %c10 = arith.constant 10 : index
    %236 = memref.load %arg1[%c10] : memref<193xf32, #tpu.memory_space<smem>>
    %237 = vector.broadcast %236 : f32 to vector<16x128xf32>
    %238 = arith.mulf %237, %4 : vector<16x128xf32>
    %c11 = arith.constant 11 : index
    %239 = memref.load %arg1[%c11] : memref<193xf32, #tpu.memory_space<smem>>
    %240 = vector.broadcast %239 : f32 to vector<16x128xf32>
    %241 = arith.mulf %240, %7 : vector<16x128xf32>
    %242 = arith.addf %238, %241 : vector<16x128xf32>
    %c37 = arith.constant 37 : index
    %243 = memref.load %arg1[%c37] : memref<193xf32, #tpu.memory_space<smem>>
    %244 = vector.broadcast %243 : f32 to vector<16x128xf32>
    %245 = arith.addf %242, %244 : vector<16x128xf32>
    %cst_16 = arith.constant 0.000000e+00 : f32
    %246 = vector.broadcast %cst_16 : f32 to vector<16x128xf32>
    %247 = arith.maximumf %245, %246 : vector<16x128xf32>
    %c53 = arith.constant 53 : index
    %248 = memref.load %arg1[%c53] : memref<193xf32, #tpu.memory_space<smem>>
    %249 = vector.broadcast %248 : f32 to vector<16x128xf32>
    %250 = arith.mulf %249, %247 : vector<16x128xf32>
    %251 = arith.addf %207, %250 : vector<16x128xf32>
    %c69 = arith.constant 69 : index
    %252 = memref.load %arg1[%c69] : memref<193xf32, #tpu.memory_space<smem>>
    %253 = vector.broadcast %252 : f32 to vector<16x128xf32>
    %254 = arith.mulf %253, %247 : vector<16x128xf32>
    %255 = arith.addf %211, %254 : vector<16x128xf32>
    %c85 = arith.constant 85 : index
    %256 = memref.load %arg1[%c85] : memref<193xf32, #tpu.memory_space<smem>>
    %257 = vector.broadcast %256 : f32 to vector<16x128xf32>
    %258 = arith.mulf %257, %247 : vector<16x128xf32>
    %259 = arith.addf %215, %258 : vector<16x128xf32>
    %c101 = arith.constant 101 : index
    %260 = memref.load %arg1[%c101] : memref<193xf32, #tpu.memory_space<smem>>
    %261 = vector.broadcast %260 : f32 to vector<16x128xf32>
    %262 = arith.mulf %261, %247 : vector<16x128xf32>
    %263 = arith.addf %219, %262 : vector<16x128xf32>
    %c117 = arith.constant 117 : index
    %264 = memref.load %arg1[%c117] : memref<193xf32, #tpu.memory_space<smem>>
    %265 = vector.broadcast %264 : f32 to vector<16x128xf32>
    %266 = arith.mulf %265, %247 : vector<16x128xf32>
    %267 = arith.addf %223, %266 : vector<16x128xf32>
    %c133 = arith.constant 133 : index
    %268 = memref.load %arg1[%c133] : memref<193xf32, #tpu.memory_space<smem>>
    %269 = vector.broadcast %268 : f32 to vector<16x128xf32>
    %270 = arith.mulf %269, %247 : vector<16x128xf32>
    %271 = arith.addf %227, %270 : vector<16x128xf32>
    %c149 = arith.constant 149 : index
    %272 = memref.load %arg1[%c149] : memref<193xf32, #tpu.memory_space<smem>>
    %273 = vector.broadcast %272 : f32 to vector<16x128xf32>
    %274 = arith.mulf %273, %247 : vector<16x128xf32>
    %275 = arith.addf %231, %274 : vector<16x128xf32>
    %c165 = arith.constant 165 : index
    %276 = memref.load %arg1[%c165] : memref<193xf32, #tpu.memory_space<smem>>
    %277 = vector.broadcast %276 : f32 to vector<16x128xf32>
    %278 = arith.mulf %277, %247 : vector<16x128xf32>
    %279 = arith.addf %235, %278 : vector<16x128xf32>
    %c12 = arith.constant 12 : index
    %280 = memref.load %arg1[%c12] : memref<193xf32, #tpu.memory_space<smem>>
    %281 = vector.broadcast %280 : f32 to vector<16x128xf32>
    %282 = arith.mulf %281, %4 : vector<16x128xf32>
    %c13 = arith.constant 13 : index
    %283 = memref.load %arg1[%c13] : memref<193xf32, #tpu.memory_space<smem>>
    %284 = vector.broadcast %283 : f32 to vector<16x128xf32>
    %285 = arith.mulf %284, %7 : vector<16x128xf32>
    %286 = arith.addf %282, %285 : vector<16x128xf32>
    %c38 = arith.constant 38 : index
    %287 = memref.load %arg1[%c38] : memref<193xf32, #tpu.memory_space<smem>>
    %288 = vector.broadcast %287 : f32 to vector<16x128xf32>
    %289 = arith.addf %286, %288 : vector<16x128xf32>
    %cst_17 = arith.constant 0.000000e+00 : f32
    %290 = vector.broadcast %cst_17 : f32 to vector<16x128xf32>
    %291 = arith.maximumf %289, %290 : vector<16x128xf32>
    %c54 = arith.constant 54 : index
    %292 = memref.load %arg1[%c54] : memref<193xf32, #tpu.memory_space<smem>>
    %293 = vector.broadcast %292 : f32 to vector<16x128xf32>
    %294 = arith.mulf %293, %291 : vector<16x128xf32>
    %295 = arith.addf %251, %294 : vector<16x128xf32>
    %c70 = arith.constant 70 : index
    %296 = memref.load %arg1[%c70] : memref<193xf32, #tpu.memory_space<smem>>
    %297 = vector.broadcast %296 : f32 to vector<16x128xf32>
    %298 = arith.mulf %297, %291 : vector<16x128xf32>
    %299 = arith.addf %255, %298 : vector<16x128xf32>
    %c86 = arith.constant 86 : index
    %300 = memref.load %arg1[%c86] : memref<193xf32, #tpu.memory_space<smem>>
    %301 = vector.broadcast %300 : f32 to vector<16x128xf32>
    %302 = arith.mulf %301, %291 : vector<16x128xf32>
    %303 = arith.addf %259, %302 : vector<16x128xf32>
    %c102 = arith.constant 102 : index
    %304 = memref.load %arg1[%c102] : memref<193xf32, #tpu.memory_space<smem>>
    %305 = vector.broadcast %304 : f32 to vector<16x128xf32>
    %306 = arith.mulf %305, %291 : vector<16x128xf32>
    %307 = arith.addf %263, %306 : vector<16x128xf32>
    %c118 = arith.constant 118 : index
    %308 = memref.load %arg1[%c118] : memref<193xf32, #tpu.memory_space<smem>>
    %309 = vector.broadcast %308 : f32 to vector<16x128xf32>
    %310 = arith.mulf %309, %291 : vector<16x128xf32>
    %311 = arith.addf %267, %310 : vector<16x128xf32>
    %c134 = arith.constant 134 : index
    %312 = memref.load %arg1[%c134] : memref<193xf32, #tpu.memory_space<smem>>
    %313 = vector.broadcast %312 : f32 to vector<16x128xf32>
    %314 = arith.mulf %313, %291 : vector<16x128xf32>
    %315 = arith.addf %271, %314 : vector<16x128xf32>
    %c150 = arith.constant 150 : index
    %316 = memref.load %arg1[%c150] : memref<193xf32, #tpu.memory_space<smem>>
    %317 = vector.broadcast %316 : f32 to vector<16x128xf32>
    %318 = arith.mulf %317, %291 : vector<16x128xf32>
    %319 = arith.addf %275, %318 : vector<16x128xf32>
    %c166 = arith.constant 166 : index
    %320 = memref.load %arg1[%c166] : memref<193xf32, #tpu.memory_space<smem>>
    %321 = vector.broadcast %320 : f32 to vector<16x128xf32>
    %322 = arith.mulf %321, %291 : vector<16x128xf32>
    %323 = arith.addf %279, %322 : vector<16x128xf32>
    %c14 = arith.constant 14 : index
    %324 = memref.load %arg1[%c14] : memref<193xf32, #tpu.memory_space<smem>>
    %325 = vector.broadcast %324 : f32 to vector<16x128xf32>
    %326 = arith.mulf %325, %4 : vector<16x128xf32>
    %c15 = arith.constant 15 : index
    %327 = memref.load %arg1[%c15] : memref<193xf32, #tpu.memory_space<smem>>
    %328 = vector.broadcast %327 : f32 to vector<16x128xf32>
    %329 = arith.mulf %328, %7 : vector<16x128xf32>
    %330 = arith.addf %326, %329 : vector<16x128xf32>
    %c39 = arith.constant 39 : index
    %331 = memref.load %arg1[%c39] : memref<193xf32, #tpu.memory_space<smem>>
    %332 = vector.broadcast %331 : f32 to vector<16x128xf32>
    %333 = arith.addf %330, %332 : vector<16x128xf32>
    %cst_18 = arith.constant 0.000000e+00 : f32
    %334 = vector.broadcast %cst_18 : f32 to vector<16x128xf32>
    %335 = arith.maximumf %333, %334 : vector<16x128xf32>
    %c55 = arith.constant 55 : index
    %336 = memref.load %arg1[%c55] : memref<193xf32, #tpu.memory_space<smem>>
    %337 = vector.broadcast %336 : f32 to vector<16x128xf32>
    %338 = arith.mulf %337, %335 : vector<16x128xf32>
    %339 = arith.addf %295, %338 : vector<16x128xf32>
    %c71 = arith.constant 71 : index
    %340 = memref.load %arg1[%c71] : memref<193xf32, #tpu.memory_space<smem>>
    %341 = vector.broadcast %340 : f32 to vector<16x128xf32>
    %342 = arith.mulf %341, %335 : vector<16x128xf32>
    %343 = arith.addf %299, %342 : vector<16x128xf32>
    %c87 = arith.constant 87 : index
    %344 = memref.load %arg1[%c87] : memref<193xf32, #tpu.memory_space<smem>>
    %345 = vector.broadcast %344 : f32 to vector<16x128xf32>
    %346 = arith.mulf %345, %335 : vector<16x128xf32>
    %347 = arith.addf %303, %346 : vector<16x128xf32>
    %c103 = arith.constant 103 : index
    %348 = memref.load %arg1[%c103] : memref<193xf32, #tpu.memory_space<smem>>
    %349 = vector.broadcast %348 : f32 to vector<16x128xf32>
    %350 = arith.mulf %349, %335 : vector<16x128xf32>
    %351 = arith.addf %307, %350 : vector<16x128xf32>
    %c119 = arith.constant 119 : index
    %352 = memref.load %arg1[%c119] : memref<193xf32, #tpu.memory_space<smem>>
    %353 = vector.broadcast %352 : f32 to vector<16x128xf32>
    %354 = arith.mulf %353, %335 : vector<16x128xf32>
    %355 = arith.addf %311, %354 : vector<16x128xf32>
    %c135 = arith.constant 135 : index
    %356 = memref.load %arg1[%c135] : memref<193xf32, #tpu.memory_space<smem>>
    %357 = vector.broadcast %356 : f32 to vector<16x128xf32>
    %358 = arith.mulf %357, %335 : vector<16x128xf32>
    %359 = arith.addf %315, %358 : vector<16x128xf32>
    %c151 = arith.constant 151 : index
    %360 = memref.load %arg1[%c151] : memref<193xf32, #tpu.memory_space<smem>>
    %361 = vector.broadcast %360 : f32 to vector<16x128xf32>
    %362 = arith.mulf %361, %335 : vector<16x128xf32>
    %363 = arith.addf %319, %362 : vector<16x128xf32>
    %c167 = arith.constant 167 : index
    %364 = memref.load %arg1[%c167] : memref<193xf32, #tpu.memory_space<smem>>
    %365 = vector.broadcast %364 : f32 to vector<16x128xf32>
    %366 = arith.mulf %365, %335 : vector<16x128xf32>
    %367 = arith.addf %323, %366 : vector<16x128xf32>
    %c16 = arith.constant 16 : index
    %368 = memref.load %arg1[%c16] : memref<193xf32, #tpu.memory_space<smem>>
    %369 = vector.broadcast %368 : f32 to vector<16x128xf32>
    %370 = arith.mulf %369, %4 : vector<16x128xf32>
    %c17 = arith.constant 17 : index
    %371 = memref.load %arg1[%c17] : memref<193xf32, #tpu.memory_space<smem>>
    %372 = vector.broadcast %371 : f32 to vector<16x128xf32>
    %373 = arith.mulf %372, %7 : vector<16x128xf32>
    %374 = arith.addf %370, %373 : vector<16x128xf32>
    %c40 = arith.constant 40 : index
    %375 = memref.load %arg1[%c40] : memref<193xf32, #tpu.memory_space<smem>>
    %376 = vector.broadcast %375 : f32 to vector<16x128xf32>
    %377 = arith.addf %374, %376 : vector<16x128xf32>
    %cst_19 = arith.constant 0.000000e+00 : f32
    %378 = vector.broadcast %cst_19 : f32 to vector<16x128xf32>
    %379 = arith.maximumf %377, %378 : vector<16x128xf32>
    %c56 = arith.constant 56 : index
    %380 = memref.load %arg1[%c56] : memref<193xf32, #tpu.memory_space<smem>>
    %381 = vector.broadcast %380 : f32 to vector<16x128xf32>
    %382 = arith.mulf %381, %379 : vector<16x128xf32>
    %383 = arith.addf %339, %382 : vector<16x128xf32>
    %c72 = arith.constant 72 : index
    %384 = memref.load %arg1[%c72] : memref<193xf32, #tpu.memory_space<smem>>
    %385 = vector.broadcast %384 : f32 to vector<16x128xf32>
    %386 = arith.mulf %385, %379 : vector<16x128xf32>
    %387 = arith.addf %343, %386 : vector<16x128xf32>
    %c88 = arith.constant 88 : index
    %388 = memref.load %arg1[%c88] : memref<193xf32, #tpu.memory_space<smem>>
    %389 = vector.broadcast %388 : f32 to vector<16x128xf32>
    %390 = arith.mulf %389, %379 : vector<16x128xf32>
    %391 = arith.addf %347, %390 : vector<16x128xf32>
    %c104 = arith.constant 104 : index
    %392 = memref.load %arg1[%c104] : memref<193xf32, #tpu.memory_space<smem>>
    %393 = vector.broadcast %392 : f32 to vector<16x128xf32>
    %394 = arith.mulf %393, %379 : vector<16x128xf32>
    %395 = arith.addf %351, %394 : vector<16x128xf32>
    %c120 = arith.constant 120 : index
    %396 = memref.load %arg1[%c120] : memref<193xf32, #tpu.memory_space<smem>>
    %397 = vector.broadcast %396 : f32 to vector<16x128xf32>
    %398 = arith.mulf %397, %379 : vector<16x128xf32>
    %399 = arith.addf %355, %398 : vector<16x128xf32>
    %c136 = arith.constant 136 : index
    %400 = memref.load %arg1[%c136] : memref<193xf32, #tpu.memory_space<smem>>
    %401 = vector.broadcast %400 : f32 to vector<16x128xf32>
    %402 = arith.mulf %401, %379 : vector<16x128xf32>
    %403 = arith.addf %359, %402 : vector<16x128xf32>
    %c152 = arith.constant 152 : index
    %404 = memref.load %arg1[%c152] : memref<193xf32, #tpu.memory_space<smem>>
    %405 = vector.broadcast %404 : f32 to vector<16x128xf32>
    %406 = arith.mulf %405, %379 : vector<16x128xf32>
    %407 = arith.addf %363, %406 : vector<16x128xf32>
    %c168 = arith.constant 168 : index
    %408 = memref.load %arg1[%c168] : memref<193xf32, #tpu.memory_space<smem>>
    %409 = vector.broadcast %408 : f32 to vector<16x128xf32>
    %410 = arith.mulf %409, %379 : vector<16x128xf32>
    %411 = arith.addf %367, %410 : vector<16x128xf32>
    %c18 = arith.constant 18 : index
    %412 = memref.load %arg1[%c18] : memref<193xf32, #tpu.memory_space<smem>>
    %413 = vector.broadcast %412 : f32 to vector<16x128xf32>
    %414 = arith.mulf %413, %4 : vector<16x128xf32>
    %c19 = arith.constant 19 : index
    %415 = memref.load %arg1[%c19] : memref<193xf32, #tpu.memory_space<smem>>
    %416 = vector.broadcast %415 : f32 to vector<16x128xf32>
    %417 = arith.mulf %416, %7 : vector<16x128xf32>
    %418 = arith.addf %414, %417 : vector<16x128xf32>
    %c41 = arith.constant 41 : index
    %419 = memref.load %arg1[%c41] : memref<193xf32, #tpu.memory_space<smem>>
    %420 = vector.broadcast %419 : f32 to vector<16x128xf32>
    %421 = arith.addf %418, %420 : vector<16x128xf32>
    %cst_20 = arith.constant 0.000000e+00 : f32
    %422 = vector.broadcast %cst_20 : f32 to vector<16x128xf32>
    %423 = arith.maximumf %421, %422 : vector<16x128xf32>
    %c57 = arith.constant 57 : index
    %424 = memref.load %arg1[%c57] : memref<193xf32, #tpu.memory_space<smem>>
    %425 = vector.broadcast %424 : f32 to vector<16x128xf32>
    %426 = arith.mulf %425, %423 : vector<16x128xf32>
    %427 = arith.addf %383, %426 : vector<16x128xf32>
    %c73 = arith.constant 73 : index
    %428 = memref.load %arg1[%c73] : memref<193xf32, #tpu.memory_space<smem>>
    %429 = vector.broadcast %428 : f32 to vector<16x128xf32>
    %430 = arith.mulf %429, %423 : vector<16x128xf32>
    %431 = arith.addf %387, %430 : vector<16x128xf32>
    %c89 = arith.constant 89 : index
    %432 = memref.load %arg1[%c89] : memref<193xf32, #tpu.memory_space<smem>>
    %433 = vector.broadcast %432 : f32 to vector<16x128xf32>
    %434 = arith.mulf %433, %423 : vector<16x128xf32>
    %435 = arith.addf %391, %434 : vector<16x128xf32>
    %c105 = arith.constant 105 : index
    %436 = memref.load %arg1[%c105] : memref<193xf32, #tpu.memory_space<smem>>
    %437 = vector.broadcast %436 : f32 to vector<16x128xf32>
    %438 = arith.mulf %437, %423 : vector<16x128xf32>
    %439 = arith.addf %395, %438 : vector<16x128xf32>
    %c121 = arith.constant 121 : index
    %440 = memref.load %arg1[%c121] : memref<193xf32, #tpu.memory_space<smem>>
    %441 = vector.broadcast %440 : f32 to vector<16x128xf32>
    %442 = arith.mulf %441, %423 : vector<16x128xf32>
    %443 = arith.addf %399, %442 : vector<16x128xf32>
    %c137 = arith.constant 137 : index
    %444 = memref.load %arg1[%c137] : memref<193xf32, #tpu.memory_space<smem>>
    %445 = vector.broadcast %444 : f32 to vector<16x128xf32>
    %446 = arith.mulf %445, %423 : vector<16x128xf32>
    %447 = arith.addf %403, %446 : vector<16x128xf32>
    %c153 = arith.constant 153 : index
    %448 = memref.load %arg1[%c153] : memref<193xf32, #tpu.memory_space<smem>>
    %449 = vector.broadcast %448 : f32 to vector<16x128xf32>
    %450 = arith.mulf %449, %423 : vector<16x128xf32>
    %451 = arith.addf %407, %450 : vector<16x128xf32>
    %c169 = arith.constant 169 : index
    %452 = memref.load %arg1[%c169] : memref<193xf32, #tpu.memory_space<smem>>
    %453 = vector.broadcast %452 : f32 to vector<16x128xf32>
    %454 = arith.mulf %453, %423 : vector<16x128xf32>
    %455 = arith.addf %411, %454 : vector<16x128xf32>
    %c20 = arith.constant 20 : index
    %456 = memref.load %arg1[%c20] : memref<193xf32, #tpu.memory_space<smem>>
    %457 = vector.broadcast %456 : f32 to vector<16x128xf32>
    %458 = arith.mulf %457, %4 : vector<16x128xf32>
    %c21 = arith.constant 21 : index
    %459 = memref.load %arg1[%c21] : memref<193xf32, #tpu.memory_space<smem>>
    %460 = vector.broadcast %459 : f32 to vector<16x128xf32>
    %461 = arith.mulf %460, %7 : vector<16x128xf32>
    %462 = arith.addf %458, %461 : vector<16x128xf32>
    %c42 = arith.constant 42 : index
    %463 = memref.load %arg1[%c42] : memref<193xf32, #tpu.memory_space<smem>>
    %464 = vector.broadcast %463 : f32 to vector<16x128xf32>
    %465 = arith.addf %462, %464 : vector<16x128xf32>
    %cst_21 = arith.constant 0.000000e+00 : f32
    %466 = vector.broadcast %cst_21 : f32 to vector<16x128xf32>
    %467 = arith.maximumf %465, %466 : vector<16x128xf32>
    %c58 = arith.constant 58 : index
    %468 = memref.load %arg1[%c58] : memref<193xf32, #tpu.memory_space<smem>>
    %469 = vector.broadcast %468 : f32 to vector<16x128xf32>
    %470 = arith.mulf %469, %467 : vector<16x128xf32>
    %471 = arith.addf %427, %470 : vector<16x128xf32>
    %c74 = arith.constant 74 : index
    %472 = memref.load %arg1[%c74] : memref<193xf32, #tpu.memory_space<smem>>
    %473 = vector.broadcast %472 : f32 to vector<16x128xf32>
    %474 = arith.mulf %473, %467 : vector<16x128xf32>
    %475 = arith.addf %431, %474 : vector<16x128xf32>
    %c90 = arith.constant 90 : index
    %476 = memref.load %arg1[%c90] : memref<193xf32, #tpu.memory_space<smem>>
    %477 = vector.broadcast %476 : f32 to vector<16x128xf32>
    %478 = arith.mulf %477, %467 : vector<16x128xf32>
    %479 = arith.addf %435, %478 : vector<16x128xf32>
    %c106 = arith.constant 106 : index
    %480 = memref.load %arg1[%c106] : memref<193xf32, #tpu.memory_space<smem>>
    %481 = vector.broadcast %480 : f32 to vector<16x128xf32>
    %482 = arith.mulf %481, %467 : vector<16x128xf32>
    %483 = arith.addf %439, %482 : vector<16x128xf32>
    %c122 = arith.constant 122 : index
    %484 = memref.load %arg1[%c122] : memref<193xf32, #tpu.memory_space<smem>>
    %485 = vector.broadcast %484 : f32 to vector<16x128xf32>
    %486 = arith.mulf %485, %467 : vector<16x128xf32>
    %487 = arith.addf %443, %486 : vector<16x128xf32>
    %c138 = arith.constant 138 : index
    %488 = memref.load %arg1[%c138] : memref<193xf32, #tpu.memory_space<smem>>
    %489 = vector.broadcast %488 : f32 to vector<16x128xf32>
    %490 = arith.mulf %489, %467 : vector<16x128xf32>
    %491 = arith.addf %447, %490 : vector<16x128xf32>
    %c154 = arith.constant 154 : index
    %492 = memref.load %arg1[%c154] : memref<193xf32, #tpu.memory_space<smem>>
    %493 = vector.broadcast %492 : f32 to vector<16x128xf32>
    %494 = arith.mulf %493, %467 : vector<16x128xf32>
    %495 = arith.addf %451, %494 : vector<16x128xf32>
    %c170 = arith.constant 170 : index
    %496 = memref.load %arg1[%c170] : memref<193xf32, #tpu.memory_space<smem>>
    %497 = vector.broadcast %496 : f32 to vector<16x128xf32>
    %498 = arith.mulf %497, %467 : vector<16x128xf32>
    %499 = arith.addf %455, %498 : vector<16x128xf32>
    %c22 = arith.constant 22 : index
    %500 = memref.load %arg1[%c22] : memref<193xf32, #tpu.memory_space<smem>>
    %501 = vector.broadcast %500 : f32 to vector<16x128xf32>
    %502 = arith.mulf %501, %4 : vector<16x128xf32>
    %c23 = arith.constant 23 : index
    %503 = memref.load %arg1[%c23] : memref<193xf32, #tpu.memory_space<smem>>
    %504 = vector.broadcast %503 : f32 to vector<16x128xf32>
    %505 = arith.mulf %504, %7 : vector<16x128xf32>
    %506 = arith.addf %502, %505 : vector<16x128xf32>
    %c43 = arith.constant 43 : index
    %507 = memref.load %arg1[%c43] : memref<193xf32, #tpu.memory_space<smem>>
    %508 = vector.broadcast %507 : f32 to vector<16x128xf32>
    %509 = arith.addf %506, %508 : vector<16x128xf32>
    %cst_22 = arith.constant 0.000000e+00 : f32
    %510 = vector.broadcast %cst_22 : f32 to vector<16x128xf32>
    %511 = arith.maximumf %509, %510 : vector<16x128xf32>
    %c59 = arith.constant 59 : index
    %512 = memref.load %arg1[%c59] : memref<193xf32, #tpu.memory_space<smem>>
    %513 = vector.broadcast %512 : f32 to vector<16x128xf32>
    %514 = arith.mulf %513, %511 : vector<16x128xf32>
    %515 = arith.addf %471, %514 : vector<16x128xf32>
    %c75 = arith.constant 75 : index
    %516 = memref.load %arg1[%c75] : memref<193xf32, #tpu.memory_space<smem>>
    %517 = vector.broadcast %516 : f32 to vector<16x128xf32>
    %518 = arith.mulf %517, %511 : vector<16x128xf32>
    %519 = arith.addf %475, %518 : vector<16x128xf32>
    %c91 = arith.constant 91 : index
    %520 = memref.load %arg1[%c91] : memref<193xf32, #tpu.memory_space<smem>>
    %521 = vector.broadcast %520 : f32 to vector<16x128xf32>
    %522 = arith.mulf %521, %511 : vector<16x128xf32>
    %523 = arith.addf %479, %522 : vector<16x128xf32>
    %c107 = arith.constant 107 : index
    %524 = memref.load %arg1[%c107] : memref<193xf32, #tpu.memory_space<smem>>
    %525 = vector.broadcast %524 : f32 to vector<16x128xf32>
    %526 = arith.mulf %525, %511 : vector<16x128xf32>
    %527 = arith.addf %483, %526 : vector<16x128xf32>
    %c123 = arith.constant 123 : index
    %528 = memref.load %arg1[%c123] : memref<193xf32, #tpu.memory_space<smem>>
    %529 = vector.broadcast %528 : f32 to vector<16x128xf32>
    %530 = arith.mulf %529, %511 : vector<16x128xf32>
    %531 = arith.addf %487, %530 : vector<16x128xf32>
    %c139 = arith.constant 139 : index
    %532 = memref.load %arg1[%c139] : memref<193xf32, #tpu.memory_space<smem>>
    %533 = vector.broadcast %532 : f32 to vector<16x128xf32>
    %534 = arith.mulf %533, %511 : vector<16x128xf32>
    %535 = arith.addf %491, %534 : vector<16x128xf32>
    %c155 = arith.constant 155 : index
    %536 = memref.load %arg1[%c155] : memref<193xf32, #tpu.memory_space<smem>>
    %537 = vector.broadcast %536 : f32 to vector<16x128xf32>
    %538 = arith.mulf %537, %511 : vector<16x128xf32>
    %539 = arith.addf %495, %538 : vector<16x128xf32>
    %c171 = arith.constant 171 : index
    %540 = memref.load %arg1[%c171] : memref<193xf32, #tpu.memory_space<smem>>
    %541 = vector.broadcast %540 : f32 to vector<16x128xf32>
    %542 = arith.mulf %541, %511 : vector<16x128xf32>
    %543 = arith.addf %499, %542 : vector<16x128xf32>
    %c24 = arith.constant 24 : index
    %544 = memref.load %arg1[%c24] : memref<193xf32, #tpu.memory_space<smem>>
    %545 = vector.broadcast %544 : f32 to vector<16x128xf32>
    %546 = arith.mulf %545, %4 : vector<16x128xf32>
    %c25 = arith.constant 25 : index
    %547 = memref.load %arg1[%c25] : memref<193xf32, #tpu.memory_space<smem>>
    %548 = vector.broadcast %547 : f32 to vector<16x128xf32>
    %549 = arith.mulf %548, %7 : vector<16x128xf32>
    %550 = arith.addf %546, %549 : vector<16x128xf32>
    %c44 = arith.constant 44 : index
    %551 = memref.load %arg1[%c44] : memref<193xf32, #tpu.memory_space<smem>>
    %552 = vector.broadcast %551 : f32 to vector<16x128xf32>
    %553 = arith.addf %550, %552 : vector<16x128xf32>
    %cst_23 = arith.constant 0.000000e+00 : f32
    %554 = vector.broadcast %cst_23 : f32 to vector<16x128xf32>
    %555 = arith.maximumf %553, %554 : vector<16x128xf32>
    %c60 = arith.constant 60 : index
    %556 = memref.load %arg1[%c60] : memref<193xf32, #tpu.memory_space<smem>>
    %557 = vector.broadcast %556 : f32 to vector<16x128xf32>
    %558 = arith.mulf %557, %555 : vector<16x128xf32>
    %559 = arith.addf %515, %558 : vector<16x128xf32>
    %c76 = arith.constant 76 : index
    %560 = memref.load %arg1[%c76] : memref<193xf32, #tpu.memory_space<smem>>
    %561 = vector.broadcast %560 : f32 to vector<16x128xf32>
    %562 = arith.mulf %561, %555 : vector<16x128xf32>
    %563 = arith.addf %519, %562 : vector<16x128xf32>
    %c92 = arith.constant 92 : index
    %564 = memref.load %arg1[%c92] : memref<193xf32, #tpu.memory_space<smem>>
    %565 = vector.broadcast %564 : f32 to vector<16x128xf32>
    %566 = arith.mulf %565, %555 : vector<16x128xf32>
    %567 = arith.addf %523, %566 : vector<16x128xf32>
    %c108 = arith.constant 108 : index
    %568 = memref.load %arg1[%c108] : memref<193xf32, #tpu.memory_space<smem>>
    %569 = vector.broadcast %568 : f32 to vector<16x128xf32>
    %570 = arith.mulf %569, %555 : vector<16x128xf32>
    %571 = arith.addf %527, %570 : vector<16x128xf32>
    %c124 = arith.constant 124 : index
    %572 = memref.load %arg1[%c124] : memref<193xf32, #tpu.memory_space<smem>>
    %573 = vector.broadcast %572 : f32 to vector<16x128xf32>
    %574 = arith.mulf %573, %555 : vector<16x128xf32>
    %575 = arith.addf %531, %574 : vector<16x128xf32>
    %c140 = arith.constant 140 : index
    %576 = memref.load %arg1[%c140] : memref<193xf32, #tpu.memory_space<smem>>
    %577 = vector.broadcast %576 : f32 to vector<16x128xf32>
    %578 = arith.mulf %577, %555 : vector<16x128xf32>
    %579 = arith.addf %535, %578 : vector<16x128xf32>
    %c156 = arith.constant 156 : index
    %580 = memref.load %arg1[%c156] : memref<193xf32, #tpu.memory_space<smem>>
    %581 = vector.broadcast %580 : f32 to vector<16x128xf32>
    %582 = arith.mulf %581, %555 : vector<16x128xf32>
    %583 = arith.addf %539, %582 : vector<16x128xf32>
    %c172 = arith.constant 172 : index
    %584 = memref.load %arg1[%c172] : memref<193xf32, #tpu.memory_space<smem>>
    %585 = vector.broadcast %584 : f32 to vector<16x128xf32>
    %586 = arith.mulf %585, %555 : vector<16x128xf32>
    %587 = arith.addf %543, %586 : vector<16x128xf32>
    %c26 = arith.constant 26 : index
    %588 = memref.load %arg1[%c26] : memref<193xf32, #tpu.memory_space<smem>>
    %589 = vector.broadcast %588 : f32 to vector<16x128xf32>
    %590 = arith.mulf %589, %4 : vector<16x128xf32>
    %c27 = arith.constant 27 : index
    %591 = memref.load %arg1[%c27] : memref<193xf32, #tpu.memory_space<smem>>
    %592 = vector.broadcast %591 : f32 to vector<16x128xf32>
    %593 = arith.mulf %592, %7 : vector<16x128xf32>
    %594 = arith.addf %590, %593 : vector<16x128xf32>
    %c45 = arith.constant 45 : index
    %595 = memref.load %arg1[%c45] : memref<193xf32, #tpu.memory_space<smem>>
    %596 = vector.broadcast %595 : f32 to vector<16x128xf32>
    %597 = arith.addf %594, %596 : vector<16x128xf32>
    %cst_24 = arith.constant 0.000000e+00 : f32
    %598 = vector.broadcast %cst_24 : f32 to vector<16x128xf32>
    %599 = arith.maximumf %597, %598 : vector<16x128xf32>
    %c61 = arith.constant 61 : index
    %600 = memref.load %arg1[%c61] : memref<193xf32, #tpu.memory_space<smem>>
    %601 = vector.broadcast %600 : f32 to vector<16x128xf32>
    %602 = arith.mulf %601, %599 : vector<16x128xf32>
    %603 = arith.addf %559, %602 : vector<16x128xf32>
    %c77 = arith.constant 77 : index
    %604 = memref.load %arg1[%c77] : memref<193xf32, #tpu.memory_space<smem>>
    %605 = vector.broadcast %604 : f32 to vector<16x128xf32>
    %606 = arith.mulf %605, %599 : vector<16x128xf32>
    %607 = arith.addf %563, %606 : vector<16x128xf32>
    %c93 = arith.constant 93 : index
    %608 = memref.load %arg1[%c93] : memref<193xf32, #tpu.memory_space<smem>>
    %609 = vector.broadcast %608 : f32 to vector<16x128xf32>
    %610 = arith.mulf %609, %599 : vector<16x128xf32>
    %611 = arith.addf %567, %610 : vector<16x128xf32>
    %c109 = arith.constant 109 : index
    %612 = memref.load %arg1[%c109] : memref<193xf32, #tpu.memory_space<smem>>
    %613 = vector.broadcast %612 : f32 to vector<16x128xf32>
    %614 = arith.mulf %613, %599 : vector<16x128xf32>
    %615 = arith.addf %571, %614 : vector<16x128xf32>
    %c125 = arith.constant 125 : index
    %616 = memref.load %arg1[%c125] : memref<193xf32, #tpu.memory_space<smem>>
    %617 = vector.broadcast %616 : f32 to vector<16x128xf32>
    %618 = arith.mulf %617, %599 : vector<16x128xf32>
    %619 = arith.addf %575, %618 : vector<16x128xf32>
    %c141 = arith.constant 141 : index
    %620 = memref.load %arg1[%c141] : memref<193xf32, #tpu.memory_space<smem>>
    %621 = vector.broadcast %620 : f32 to vector<16x128xf32>
    %622 = arith.mulf %621, %599 : vector<16x128xf32>
    %623 = arith.addf %579, %622 : vector<16x128xf32>
    %c157 = arith.constant 157 : index
    %624 = memref.load %arg1[%c157] : memref<193xf32, #tpu.memory_space<smem>>
    %625 = vector.broadcast %624 : f32 to vector<16x128xf32>
    %626 = arith.mulf %625, %599 : vector<16x128xf32>
    %627 = arith.addf %583, %626 : vector<16x128xf32>
    %c173 = arith.constant 173 : index
    %628 = memref.load %arg1[%c173] : memref<193xf32, #tpu.memory_space<smem>>
    %629 = vector.broadcast %628 : f32 to vector<16x128xf32>
    %630 = arith.mulf %629, %599 : vector<16x128xf32>
    %631 = arith.addf %587, %630 : vector<16x128xf32>
    %c28 = arith.constant 28 : index
    %632 = memref.load %arg1[%c28] : memref<193xf32, #tpu.memory_space<smem>>
    %633 = vector.broadcast %632 : f32 to vector<16x128xf32>
    %634 = arith.mulf %633, %4 : vector<16x128xf32>
    %c29 = arith.constant 29 : index
    %635 = memref.load %arg1[%c29] : memref<193xf32, #tpu.memory_space<smem>>
    %636 = vector.broadcast %635 : f32 to vector<16x128xf32>
    %637 = arith.mulf %636, %7 : vector<16x128xf32>
    %638 = arith.addf %634, %637 : vector<16x128xf32>
    %c46 = arith.constant 46 : index
    %639 = memref.load %arg1[%c46] : memref<193xf32, #tpu.memory_space<smem>>
    %640 = vector.broadcast %639 : f32 to vector<16x128xf32>
    %641 = arith.addf %638, %640 : vector<16x128xf32>
    %cst_25 = arith.constant 0.000000e+00 : f32
    %642 = vector.broadcast %cst_25 : f32 to vector<16x128xf32>
    %643 = arith.maximumf %641, %642 : vector<16x128xf32>
    %c62 = arith.constant 62 : index
    %644 = memref.load %arg1[%c62] : memref<193xf32, #tpu.memory_space<smem>>
    %645 = vector.broadcast %644 : f32 to vector<16x128xf32>
    %646 = arith.mulf %645, %643 : vector<16x128xf32>
    %647 = arith.addf %603, %646 : vector<16x128xf32>
    %c78 = arith.constant 78 : index
    %648 = memref.load %arg1[%c78] : memref<193xf32, #tpu.memory_space<smem>>
    %649 = vector.broadcast %648 : f32 to vector<16x128xf32>
    %650 = arith.mulf %649, %643 : vector<16x128xf32>
    %651 = arith.addf %607, %650 : vector<16x128xf32>
    %c94 = arith.constant 94 : index
    %652 = memref.load %arg1[%c94] : memref<193xf32, #tpu.memory_space<smem>>
    %653 = vector.broadcast %652 : f32 to vector<16x128xf32>
    %654 = arith.mulf %653, %643 : vector<16x128xf32>
    %655 = arith.addf %611, %654 : vector<16x128xf32>
    %c110 = arith.constant 110 : index
    %656 = memref.load %arg1[%c110] : memref<193xf32, #tpu.memory_space<smem>>
    %657 = vector.broadcast %656 : f32 to vector<16x128xf32>
    %658 = arith.mulf %657, %643 : vector<16x128xf32>
    %659 = arith.addf %615, %658 : vector<16x128xf32>
    %c126 = arith.constant 126 : index
    %660 = memref.load %arg1[%c126] : memref<193xf32, #tpu.memory_space<smem>>
    %661 = vector.broadcast %660 : f32 to vector<16x128xf32>
    %662 = arith.mulf %661, %643 : vector<16x128xf32>
    %663 = arith.addf %619, %662 : vector<16x128xf32>
    %c142 = arith.constant 142 : index
    %664 = memref.load %arg1[%c142] : memref<193xf32, #tpu.memory_space<smem>>
    %665 = vector.broadcast %664 : f32 to vector<16x128xf32>
    %666 = arith.mulf %665, %643 : vector<16x128xf32>
    %667 = arith.addf %623, %666 : vector<16x128xf32>
    %c158 = arith.constant 158 : index
    %668 = memref.load %arg1[%c158] : memref<193xf32, #tpu.memory_space<smem>>
    %669 = vector.broadcast %668 : f32 to vector<16x128xf32>
    %670 = arith.mulf %669, %643 : vector<16x128xf32>
    %671 = arith.addf %627, %670 : vector<16x128xf32>
    %c174 = arith.constant 174 : index
    %672 = memref.load %arg1[%c174] : memref<193xf32, #tpu.memory_space<smem>>
    %673 = vector.broadcast %672 : f32 to vector<16x128xf32>
    %674 = arith.mulf %673, %643 : vector<16x128xf32>
    %675 = arith.addf %631, %674 : vector<16x128xf32>
    %c30 = arith.constant 30 : index
    %676 = memref.load %arg1[%c30] : memref<193xf32, #tpu.memory_space<smem>>
    %677 = vector.broadcast %676 : f32 to vector<16x128xf32>
    %678 = arith.mulf %677, %4 : vector<16x128xf32>
    %c31 = arith.constant 31 : index
    %679 = memref.load %arg1[%c31] : memref<193xf32, #tpu.memory_space<smem>>
    %680 = vector.broadcast %679 : f32 to vector<16x128xf32>
    %681 = arith.mulf %680, %7 : vector<16x128xf32>
    %682 = arith.addf %678, %681 : vector<16x128xf32>
    %c47 = arith.constant 47 : index
    %683 = memref.load %arg1[%c47] : memref<193xf32, #tpu.memory_space<smem>>
    %684 = vector.broadcast %683 : f32 to vector<16x128xf32>
    %685 = arith.addf %682, %684 : vector<16x128xf32>
    %cst_26 = arith.constant 0.000000e+00 : f32
    %686 = vector.broadcast %cst_26 : f32 to vector<16x128xf32>
    %687 = arith.maximumf %685, %686 : vector<16x128xf32>
    %c63 = arith.constant 63 : index
    %688 = memref.load %arg1[%c63] : memref<193xf32, #tpu.memory_space<smem>>
    %689 = vector.broadcast %688 : f32 to vector<16x128xf32>
    %690 = arith.mulf %689, %687 : vector<16x128xf32>
    %691 = arith.addf %647, %690 : vector<16x128xf32>
    %c79 = arith.constant 79 : index
    %692 = memref.load %arg1[%c79] : memref<193xf32, #tpu.memory_space<smem>>
    %693 = vector.broadcast %692 : f32 to vector<16x128xf32>
    %694 = arith.mulf %693, %687 : vector<16x128xf32>
    %695 = arith.addf %651, %694 : vector<16x128xf32>
    %c95 = arith.constant 95 : index
    %696 = memref.load %arg1[%c95] : memref<193xf32, #tpu.memory_space<smem>>
    %697 = vector.broadcast %696 : f32 to vector<16x128xf32>
    %698 = arith.mulf %697, %687 : vector<16x128xf32>
    %699 = arith.addf %655, %698 : vector<16x128xf32>
    %c111 = arith.constant 111 : index
    %700 = memref.load %arg1[%c111] : memref<193xf32, #tpu.memory_space<smem>>
    %701 = vector.broadcast %700 : f32 to vector<16x128xf32>
    %702 = arith.mulf %701, %687 : vector<16x128xf32>
    %703 = arith.addf %659, %702 : vector<16x128xf32>
    %c127 = arith.constant 127 : index
    %704 = memref.load %arg1[%c127] : memref<193xf32, #tpu.memory_space<smem>>
    %705 = vector.broadcast %704 : f32 to vector<16x128xf32>
    %706 = arith.mulf %705, %687 : vector<16x128xf32>
    %707 = arith.addf %663, %706 : vector<16x128xf32>
    %c143 = arith.constant 143 : index
    %708 = memref.load %arg1[%c143] : memref<193xf32, #tpu.memory_space<smem>>
    %709 = vector.broadcast %708 : f32 to vector<16x128xf32>
    %710 = arith.mulf %709, %687 : vector<16x128xf32>
    %711 = arith.addf %667, %710 : vector<16x128xf32>
    %c159 = arith.constant 159 : index
    %712 = memref.load %arg1[%c159] : memref<193xf32, #tpu.memory_space<smem>>
    %713 = vector.broadcast %712 : f32 to vector<16x128xf32>
    %714 = arith.mulf %713, %687 : vector<16x128xf32>
    %715 = arith.addf %671, %714 : vector<16x128xf32>
    %c175 = arith.constant 175 : index
    %716 = memref.load %arg1[%c175] : memref<193xf32, #tpu.memory_space<smem>>
    %717 = vector.broadcast %716 : f32 to vector<16x128xf32>
    %718 = arith.mulf %717, %687 : vector<16x128xf32>
    %719 = arith.addf %675, %718 : vector<16x128xf32>
    %cst_27 = arith.constant 0.000000e+00 : f32
    %720 = vector.broadcast %cst_27 : f32 to vector<16x128xf32>
    %c176 = arith.constant 176 : index
    %721 = memref.load %arg1[%c176] : memref<193xf32, #tpu.memory_space<smem>>
    %722 = vector.broadcast %721 : f32 to vector<16x128xf32>
    %723 = arith.addf %691, %722 : vector<16x128xf32>
    %cst_28 = arith.constant 0.000000e+00 : f32
    %724 = vector.broadcast %cst_28 : f32 to vector<16x128xf32>
    %725 = arith.maximumf %723, %724 : vector<16x128xf32>
    %c184 = arith.constant 184 : index
    %726 = memref.load %arg1[%c184] : memref<193xf32, #tpu.memory_space<smem>>
    %727 = vector.broadcast %726 : f32 to vector<16x128xf32>
    %728 = arith.mulf %727, %725 : vector<16x128xf32>
    %729 = arith.addf %720, %728 : vector<16x128xf32>
    %c177 = arith.constant 177 : index
    %730 = memref.load %arg1[%c177] : memref<193xf32, #tpu.memory_space<smem>>
    %731 = vector.broadcast %730 : f32 to vector<16x128xf32>
    %732 = arith.addf %695, %731 : vector<16x128xf32>
    %cst_29 = arith.constant 0.000000e+00 : f32
    %733 = vector.broadcast %cst_29 : f32 to vector<16x128xf32>
    %734 = arith.maximumf %732, %733 : vector<16x128xf32>
    %c185 = arith.constant 185 : index
    %735 = memref.load %arg1[%c185] : memref<193xf32, #tpu.memory_space<smem>>
    %736 = vector.broadcast %735 : f32 to vector<16x128xf32>
    %737 = arith.mulf %736, %734 : vector<16x128xf32>
    %738 = arith.addf %729, %737 : vector<16x128xf32>
    %c178 = arith.constant 178 : index
    %739 = memref.load %arg1[%c178] : memref<193xf32, #tpu.memory_space<smem>>
    %740 = vector.broadcast %739 : f32 to vector<16x128xf32>
    %741 = arith.addf %699, %740 : vector<16x128xf32>
    %cst_30 = arith.constant 0.000000e+00 : f32
    %742 = vector.broadcast %cst_30 : f32 to vector<16x128xf32>
    %743 = arith.maximumf %741, %742 : vector<16x128xf32>
    %c186 = arith.constant 186 : index
    %744 = memref.load %arg1[%c186] : memref<193xf32, #tpu.memory_space<smem>>
    %745 = vector.broadcast %744 : f32 to vector<16x128xf32>
    %746 = arith.mulf %745, %743 : vector<16x128xf32>
    %747 = arith.addf %738, %746 : vector<16x128xf32>
    %c179 = arith.constant 179 : index
    %748 = memref.load %arg1[%c179] : memref<193xf32, #tpu.memory_space<smem>>
    %749 = vector.broadcast %748 : f32 to vector<16x128xf32>
    %750 = arith.addf %703, %749 : vector<16x128xf32>
    %cst_31 = arith.constant 0.000000e+00 : f32
    %751 = vector.broadcast %cst_31 : f32 to vector<16x128xf32>
    %752 = arith.maximumf %750, %751 : vector<16x128xf32>
    %c187 = arith.constant 187 : index
    %753 = memref.load %arg1[%c187] : memref<193xf32, #tpu.memory_space<smem>>
    %754 = vector.broadcast %753 : f32 to vector<16x128xf32>
    %755 = arith.mulf %754, %752 : vector<16x128xf32>
    %756 = arith.addf %747, %755 : vector<16x128xf32>
    %c180 = arith.constant 180 : index
    %757 = memref.load %arg1[%c180] : memref<193xf32, #tpu.memory_space<smem>>
    %758 = vector.broadcast %757 : f32 to vector<16x128xf32>
    %759 = arith.addf %707, %758 : vector<16x128xf32>
    %cst_32 = arith.constant 0.000000e+00 : f32
    %760 = vector.broadcast %cst_32 : f32 to vector<16x128xf32>
    %761 = arith.maximumf %759, %760 : vector<16x128xf32>
    %c188 = arith.constant 188 : index
    %762 = memref.load %arg1[%c188] : memref<193xf32, #tpu.memory_space<smem>>
    %763 = vector.broadcast %762 : f32 to vector<16x128xf32>
    %764 = arith.mulf %763, %761 : vector<16x128xf32>
    %765 = arith.addf %756, %764 : vector<16x128xf32>
    %c181 = arith.constant 181 : index
    %766 = memref.load %arg1[%c181] : memref<193xf32, #tpu.memory_space<smem>>
    %767 = vector.broadcast %766 : f32 to vector<16x128xf32>
    %768 = arith.addf %711, %767 : vector<16x128xf32>
    %cst_33 = arith.constant 0.000000e+00 : f32
    %769 = vector.broadcast %cst_33 : f32 to vector<16x128xf32>
    %770 = arith.maximumf %768, %769 : vector<16x128xf32>
    %c189 = arith.constant 189 : index
    %771 = memref.load %arg1[%c189] : memref<193xf32, #tpu.memory_space<smem>>
    %772 = vector.broadcast %771 : f32 to vector<16x128xf32>
    %773 = arith.mulf %772, %770 : vector<16x128xf32>
    %774 = arith.addf %765, %773 : vector<16x128xf32>
    %c182 = arith.constant 182 : index
    %775 = memref.load %arg1[%c182] : memref<193xf32, #tpu.memory_space<smem>>
    %776 = vector.broadcast %775 : f32 to vector<16x128xf32>
    %777 = arith.addf %715, %776 : vector<16x128xf32>
    %cst_34 = arith.constant 0.000000e+00 : f32
    %778 = vector.broadcast %cst_34 : f32 to vector<16x128xf32>
    %779 = arith.maximumf %777, %778 : vector<16x128xf32>
    %c190 = arith.constant 190 : index
    %780 = memref.load %arg1[%c190] : memref<193xf32, #tpu.memory_space<smem>>
    %781 = vector.broadcast %780 : f32 to vector<16x128xf32>
    %782 = arith.mulf %781, %779 : vector<16x128xf32>
    %783 = arith.addf %774, %782 : vector<16x128xf32>
    %c183 = arith.constant 183 : index
    %784 = memref.load %arg1[%c183] : memref<193xf32, #tpu.memory_space<smem>>
    %785 = vector.broadcast %784 : f32 to vector<16x128xf32>
    %786 = arith.addf %719, %785 : vector<16x128xf32>
    %cst_35 = arith.constant 0.000000e+00 : f32
    %787 = vector.broadcast %cst_35 : f32 to vector<16x128xf32>
    %788 = arith.maximumf %786, %787 : vector<16x128xf32>
    %c191 = arith.constant 191 : index
    %789 = memref.load %arg1[%c191] : memref<193xf32, #tpu.memory_space<smem>>
    %790 = vector.broadcast %789 : f32 to vector<16x128xf32>
    %791 = arith.mulf %790, %788 : vector<16x128xf32>
    %792 = arith.addf %783, %791 : vector<16x128xf32>
    %c192 = arith.constant 192 : index
    %793 = memref.load %arg1[%c192] : memref<193xf32, #tpu.memory_space<smem>>
    %794 = vector.broadcast %793 : f32 to vector<16x128xf32>
    %795 = arith.addf %792, %794 : vector<16x128xf32>
    %796 = arith.negf %795 : vector<16x128xf32>
    %797 = math.exp %796 : vector<16x128xf32>
    %cst_36 = arith.constant 1.000000e+00 : f32
    %798 = vector.broadcast %cst_36 : f32 to vector<16x128xf32>
    %799 = arith.addf %798, %797 : vector<16x128xf32>
    %800 = arith.divf %798, %799 : vector<16x128xf32>
    %801 = arith.index_cast %1 : i32 to index
    %c0_37 = arith.constant 0 : index
    %802 = vector.load %arg3[%801, %c0_37] : memref<16x128xf32, #tpu.memory_space<vmem>>, vector<16x128xf32>
    tpu.vector_store %arg3[%801, %c0_37], %800 {strides = array<i32>} : memref<16x128xf32, #tpu.memory_space<vmem>>, vector<16x128xf32>,
    %c1_i32 = arith.constant 1 : i32
    return
  }
  func.func @transform_0(%arg0: i32) -> i32 {
    %c0_i32 = arith.constant 0 : i32
    %c0_i32_0 = arith.constant 0 : i32
    return %c0_i32 : i32
  }
  func.func @transform_1(%arg0: i32) -> (i32, i32, i32) {
    %c0_i32 = arith.constant 0 : i32
    %c0_i32_0 = arith.constant 0 : i32
    %c0_i32_1 = arith.constant 0 : i32
    return %c0_i32, %arg0, %c0_i32_0 : i32, i32, i32
  }
  func.func @transform_2(%arg0: i32) -> (i32, i32) {
    %c0_i32 = arith.constant 0 : i32
    %c0_i32_0 = arith.constant 0 : i32
    return %arg0, %c0_i32 : i32, i32
  }
}

</mosaic_0001>

<bundles_post_ra>
// kernel: tpu_custom_call.1
= control target key start
LH: loop header
LB: loop body
LE: loop exit
PB: predicated region body
PF: predicated region fallthrough
CT: control target
= control target key end

     0   :  { %7 = vsyncpa [#allocation5], 0  ;;  %s2761_s0 = inlined_call_operand.hbm [shape: f32[193], index: 0, kind: input, shape index: {}]   ;;  %s2762_s1 = inlined_call_operand.hbm [shape: f32[2,16,128], index: 1, kind: input, shape index: {}]   ;;  %s2763_s2 = inlined_call_operand.hbm [shape: f32[16,128], index: 2, kind: output, shape index: {}]  }
   0x1   :  { %8 = vsyncpa [#allocation3], 0 }
   0x2   :  { %9 = vsyncpa [#allocation4], 0  ;;  %s1411_s11 = scalar_lea.hbm %s2761_s0, 32 }
   0x3   :  { %p1412_p0 = scmp.ne.s32.totalorder %s2761_s0, %s1411_s11  ;;  %p1415_p1 = scmp.lt.u32.totalorder %s1411_s11, %s2761_s0 }
   0x5   :  { %p1417_p2 = pnand %p1415_p1, %p1412_p0 }
   0x7   :  { %1420 = shalt.err (!%p1417_p2)
}
   0x8   :  { %s1471_s16 = smov [#allocation2]   ;;  %s1472_s19 = smov [#allocation6]  }
   0x9   :  { %17 = dma.hbm_to_smem %s2761_s0, 32, %s1471_s16, [#allocation5]  }
   0xa   :  { %s23_s20 = sshll.u32 %s1472_s19, 4  ;;  %s1421_s23 = scalar_lea.hbm %s2762_s1, 512  ;;  %s24_s20 = int_to_ptr.vmem [resolvable:$true] %s23_s20 }
   0xb   :  { %p1422_p3 = scmp.ne.s32.totalorder %s2762_s1, %s1421_s23  ;;  %p1425_p4 = scmp.lt.u32.totalorder %s1421_s23, %s2762_s1 }
   0xd   :  { %p1427_p5 = pnand %p1425_p4, %p1422_p3 }
   0xf   :  { %1430 = shalt.err (!%p1427_p5)
}
  0x10   :  { %s1431_s28 = scalar_lea.vmem %s24_s20, 512  ;;  %p1436_p7 = scmp.lt.s32.totalorder %s24_s20, %s24_s20 }
  0x11   :  { %p1432_p6 = scmp.ne.s32.totalorder %s24_s20, %s1431_s28  ;;  %p1437_p8 = scmp.lt.s32.totalorder %s1431_s28, %s1431_s28 }
  0x13   :  { %p1438_p9 = por %p1437_p8, %p1436_p7 }
  0x15   :  { %p1439_p10 = pnand %p1438_p9, %p1432_p6 }
  0x17   :  { %1442 = shalt.err (!%p1439_p10)
}
  0x18   :  { %s1473_s0 = smov 128   ;;  %s1474_s29 = smov 8  }
  0x19   :  { %29 = dma.hbm_to_vmem [thread:$0]  %s2762_s1, 512, %s24_s20, [#allocation3], %s1473_s0, %s1473_s0, %s1474_s29  }
  0x1a   :  { %1465 = dma.done.wait [#allocation5], 32  }
  0x1b   :  { %1466 = vsyncadd [#allocation5], 4294967264 }
  0x1c   :  { %1467 = dma.done.wait [#allocation3], 512  }
  0x1d   :  { %1468 = vsyncadd [#allocation3], 4294966784 }
  0x1e   :  { %36 = sfence }
  0x1f   :  { %s43_s4 = sld [smem:[#allocation2]]  ;;  %s1200_s5 = sld [smem:[#allocation2 + $0x1]]  ;;  %v1528_v0 = vld [vmem:[#allocation6] sm:$0xff]  ;;  %v1530_v1 = vld [vmem:[#allocation6 + $0x8] sm:$0xff]  ;;  %v1536_v2 = vld [vmem:[#allocation6 + $0x10] sm:$0xff] }
  0x20   :  { %s1518_s6 = sld [smem:[#allocation2 + $0x20]]  ;;  %v1538_v3 = vld [vmem:[#allocation6 + $0x18] sm:$0xff]  ;;  %s1544_s14 = sld [smem:[#allocation2 + $0x2]] }
  0x21   :  { %s1520_s7 = sld [smem:[#allocation2 + $0x30]]  ;;  %s1546_s15 = sld [smem:[#allocation2 + $0x3]] }
  0x22   :  { %s1522_s8 = sld [smem:[#allocation2 + $0x40]]  ;;  %s1550_s16 = sld [smem:[#allocation2 + $0x21]] }
  0x23   :  { %s1524_s9 = sld [smem:[#allocation2 + $0x50]]  ;;  %s1552_s17 = sld [smem:[#allocation2 + $0x31]] }
  0x24   :  { %s1526_s10 = sld [smem:[#allocation2 + $0x60]]  ;;  %s1556_s18 = sld [smem:[#allocation2 + $0x41]] }
  0x25   :  { %s1532_s1 = sld [smem:[#allocation2 + $0x70]]  ;;  %v44_v4 = vstv %s43_s4  ;;  %v48_v7 = vstv %s1200_s5  ;;  %s1558_s19 = sld [smem:[#allocation2 + $0x51]] }
  0x26   :  { %s1534_s11 = sld [smem:[#allocation2 + $0x80]]  ;;  %v45_v5 = vmul.f32 %v44_v4, %v1528_v0  ;;  %v46_v6 = vmul.f32 %v44_v4, %v1530_v1  ;;  %v49_v8 = vmul.f32 %v48_v7, %v1536_v2  ;;  %v50_v9 = vmul.f32 %v48_v7, %v1538_v3  ;;  %s1569_s20 = sld [smem:[#allocation2 + $0x61]] }
  0x27   :  { %s1540_s12 = sld [smem:[#allocation2 + $0x90]]  ;;  %v54_v10 = vstv %s1518_s6  ;;  %v60_v11 = vstv %s1520_s7  ;;  %s1571_s21 = sld [smem:[#allocation2 + $0x71]]  ;;  %v108_v23 = vstv %s1544_s14  ;;  %v112_v24 = vstv %s1546_s15 }
  0x28   :  { %s1542_s13 = sld [smem:[#allocation2 + $0xa0]]  ;;  %v66_v12 = vstv %s1522_s8  ;;  %v51_v13 = vadd.f32 %v49_v8, %v45_v5  ;;  %v52_v14 = vadd.f32 %v50_v9, %v46_v6  ;;  %s1575_s22 = sld [smem:[#allocation2 + $0x81]]  ;;  %v109_v25 = vmul.f32 %v108_v23, %v1528_v0 }
  0x29   :  { %v72_v15 = vstv %s1524_s9  ;;  %s1577_s23 = sld [smem:[#allocation2 + $0x91]]  ;;  %v110_v26 = vmul.f32 %v108_v23, %v1530_v1  ;;  %v113_v27 = vmul.f32 %v112_v24, %v1536_v2  ;;  %v114_v28 = vmul.f32 %v112_v24, %v1538_v3  ;;  %s1585_s25 = sld [smem:[#allocation2 + $0x4]] }
  0x2a   :  { %v78_v16 = vstv %s1526_s10  ;;  %v55_v21 = vadd.f32 %v54_v10, %v51_v13  ;;  %v56_v22 = vadd.f32 %v54_v10, %v52_v14  ;;  %s1583_s24 = sld [smem:[#allocation2 + $0xa1]]  ;;  %v118_v31 = vstv %s1550_s16  ;;  %s1589_s26 = sld [smem:[#allocation2 + $0x5]] }
  0x2b   :  { %v84_v17 = vstv %s1532_s1  ;;  %v124_v32 = vstv %s1552_s17  ;;  %s1591_s27 = sld [smem:[#allocation2 + $0x22]]  ;;  %v115_v33 = vadd.f32 %v113_v27, %v109_v25  ;;  %v116_v34 = vadd.f32 %v114_v28, %v110_v26  ;;  %s1631_s9 = sld [smem:[#allocation2 + $0x6]] }
  0x2c   :  { %v90_v18 = vstv %s1534_s11  ;;  %v57_v29 = vmax.f32 %v55_v21, 0.0  ;;  %v58_v30 = vmax.f32 %v56_v22, 0.0  ;;  %v130_v35 = vstv %s1556_s18  ;;  %s1595_s28 = sld [smem:[#allocation2 + $0x32]]  ;;  %s1633_s10 = sld [smem:[#allocation2 + $0x7]] }
  0x2d   :  { %v96_v19 = vstv %s1540_s12  ;;  %v136_v36 = vstv %s1558_s19  ;;  %s1597_s30 = sld [smem:[#allocation2 + $0x42]]  ;;  %v119_v53 = vadd.f32 %v118_v31, %v115_v33  ;;  %v120_v54 = vadd.f32 %v118_v31, %v116_v34  ;;  %s1643_s1 = sld [smem:[#allocation2 + $0x23]] }
  0x2e   :  { %v102_v20 = vstv %s1542_s13  ;;  %v61_v37 = vmul.f32 %v60_v11, %v57_v29  ;;  %v62_v38 = vmul.f32 %v60_v11, %v58_v30  ;;  %v67_v39 = vmul.f32 %v66_v12, %v57_v29  ;;  %s1611_s3 = sld [smem:[#allocation2 + $0x52]]  ;;  %s1645_s11 = sld [smem:[#allocation2 + $0x33]] }
  0x2f   :  { %v68_v40 = vmul.f32 %v66_v12, %v58_v30  ;;  %v73_v41 = vmul.f32 %v72_v15, %v57_v29  ;;  %v74_v42 = vmul.f32 %v72_v15, %v58_v30  ;;  %v79_v43 = vmul.f32 %v78_v16, %v57_v29  ;;  %s1613_s4 = sld [smem:[#allocation2 + $0x62]]  ;;  %s1647_s12 = sld [smem:[#allocation2 + $0x43]] }
  0x30   :  { %v80_v44 = vmul.f32 %v78_v16, %v58_v30  ;;  %v85_v45 = vmul.f32 %v84_v17, %v57_v29  ;;  %v86_v46 = vmul.f32 %v84_v17, %v58_v30  ;;  %v91_v47 = vmul.f32 %v90_v18, %v57_v29  ;;  %s1615_s5 = sld [smem:[#allocation2 + $0x72]]  ;;  %s1649_s13 = sld [smem:[#allocation2 + $0x53]] }
  0x31   :  { %v92_v48 = vmul.f32 %v90_v18, %v58_v30  ;;  %v97_v49 = vmul.f32 %v96_v19, %v57_v29  ;;  %v98_v50 = vmul.f32 %v96_v19, %v58_v30  ;;  %v103_v51 = vmul.f32 %v102_v20, %v57_v29  ;;  %s1617_s6 = sld [smem:[#allocation2 + $0x82]]  ;;  %s1659_s14 = sld [smem:[#allocation2 + $0x63]] }
  0x32   :  { %v104_v52 = vmul.f32 %v102_v20, %v58_v30  ;;  %v142_v55 = vstv %s1569_s20  ;;  %v148_v56 = vstv %s1571_s21  ;;  %v154_v57 = vstv %s1575_s22  ;;  %s1619_s7 = sld [smem:[#allocation2 + $0x92]]  ;;  %s1661_s15 = sld [smem:[#allocation2 + $0x73]] }
  0x33   :  { %v160_v58 = vstv %s1577_s23  ;;  %v166_v59 = vstv %s1583_s24  ;;  %v172_v60 = vstv %s1585_s25  ;;  %v121_v61 = vmax.f32 %v119_v53, 0.0  ;;  %s1621_s8 = sld [smem:[#allocation2 + $0xa2]]  ;;  %s1671_s16 = sld [smem:[#allocation2 + $0x83]] }
  0x34   :  { %v122_v62 = vmax.f32 %v120_v54, 0.0  ;;  %v173_v63 = vmul.f32 %v172_v60, %v1528_v0  ;;  %v174_v4 = vmul.f32 %v172_v60, %v1530_v1  ;;  %v176_v5 = vstv %s1589_s26  ;;  %s1673_s17 = sld [smem:[#allocation2 + $0x93]]  ;;  %s1711_s19 = sld [smem:[#allocation2 + $0x8]] }
  0x35   :  { %v182_v6 = vstv %s1591_s27  ;;  %v188_v7 = vstv %s1595_s28  ;;  %v194_v8 = vstv %s1597_s30  ;;  %v125_v9 = vmul.f32 %v124_v32, %v121_v61  ;;  %s1709_s18 = sld [smem:[#allocation2 + $0xa3]]  ;;  %s1713_s20 = sld [smem:[#allocation2 + $0x9]] }
  0x36   :  { %v126_v10 = vmul.f32 %v124_v32, %v122_v62  ;;  %v131_v11 = vmul.f32 %v130_v35, %v121_v61  ;;  %v132_v12 = vmul.f32 %v130_v35, %v122_v62  ;;  %v137_v13 = vmul.f32 %v136_v36, %v121_v61  ;;  %s1715_s21 = sld [smem:[#allocation2 + $0x24]] }
  0x37   :  { %v138_v14 = vmul.f32 %v136_v36, %v122_v62  ;;  %v143_v15 = vmul.f32 %v142_v55, %v121_v61  ;;  %v144_v16 = vmul.f32 %v142_v55, %v122_v62  ;;  %v1623_v17 = vadd.f32 %v125_v9, %v61_v37  ;;  %s1735_s22 = sld [smem:[#allocation2 + $0x34]] }
  0x38   :  { %v1625_v18 = vadd.f32 %v126_v10, %v62_v38  ;;  %v1627_v19 = vadd.f32 %v131_v11, %v67_v39  ;;  %v1629_v20 = vadd.f32 %v132_v12, %v68_v40  ;;  %v1635_v21 = vadd.f32 %v137_v13, %v73_v41  ;;  %s1737_s23 = sld [smem:[#allocation2 + $0x44]] }
  0x39   :  { %v1637_v22 = vadd.f32 %v138_v14, %v74_v42  ;;  %v1639_v23 = vadd.f32 %v143_v15, %v79_v43  ;;  %v1641_v24 = vadd.f32 %v144_v16, %v80_v44  ;;  %v149_v25 = vmul.f32 %v148_v56, %v121_v61  ;;  %s1743_s24 = sld [smem:[#allocation2 + $0x54]] }
  0x3a   :  { %v150_v26 = vmul.f32 %v148_v56, %v122_v62  ;;  %v155_v27 = vmul.f32 %v154_v57, %v121_v61  ;;  %v156_v28 = vmul.f32 %v154_v57, %v122_v62  ;;  %v161_v29 = vmul.f32 %v160_v58, %v121_v61  ;;  %s1745_s25 = sld [smem:[#allocation2 + $0x64]] }
  0x3b   :  { %v162_v30 = vmul.f32 %v160_v58, %v122_v62  ;;  %v167_v31 = vmul.f32 %v166_v59, %v121_v61  ;;  %v168_v32 = vmul.f32 %v166_v59, %v122_v62  ;;  %v1651_v33 = vadd.f32 %v149_v25, %v85_v45  ;;  %s1747_s26 = sld [smem:[#allocation2 + $0x74]] }
  0x3c   :  { %v1653_v34 = vadd.f32 %v150_v26, %v86_v46  ;;  %v1655_v35 = vadd.f32 %v155_v27, %v91_v47  ;;  %v1657_v36 = vadd.f32 %v156_v28, %v92_v48  ;;  %v1663_v37 = vadd.f32 %v161_v29, %v97_v49  ;;  %s1749_s27 = sld [smem:[#allocation2 + $0x84]] }
  0x3d   :  { %v1665_v38 = vadd.f32 %v162_v30, %v98_v50  ;;  %v1667_v39 = vadd.f32 %v167_v31, %v103_v51  ;;  %v1669_v40 = vadd.f32 %v168_v32, %v104_v52  ;;  %v177_v41 = vmul.f32 %v176_v5, %v1536_v2  ;;  %s1759_s28 = sld [smem:[#allocation2 + $0x94]] }
  0x3e   :  { %v178_v42 = vmul.f32 %v176_v5, %v1538_v3  ;;  %v200_v43 = vstv %s1611_s3  ;;  %v206_v44 = vstv %s1613_s4  ;;  %v212_v45 = vstv %s1615_s5  ;;  %s1761_s30 = sld [smem:[#allocation2 + $0xa4]]  ;;  %s1771_s3 = sld [smem:[#allocation2 + $0xa]] }
  0x3f   :  { %v218_v46 = vstv %s1617_s6  ;;  %v224_v47 = vstv %s1619_s7  ;;  %v230_v48 = vstv %s1621_s8  ;;  %v179_v49 = vadd.f32 %v177_v41, %v173_v63  ;;  %s1773_s4 = sld [smem:[#allocation2 + $0xb]]  ;;  %s1783_s5 = sld [smem:[#allocation2 + $0x25]] }
  0x40   :  { %v180_v50 = vadd.f32 %v178_v42, %v174_v4  ;;  %v236_v51 = vstv %s1631_s9  ;;  %v240_v52 = vstv %s1633_s10  ;;  %v246_v59 = vstv %s1643_s1  ;;  %s1785_s6 = sld [smem:[#allocation2 + $0x35]] }
  0x41   :  { %v237_v53 = vmul.f32 %v236_v51, %v1528_v0  ;;  %v238_v54 = vmul.f32 %v236_v51, %v1530_v1  ;;  %v241_v55 = vmul.f32 %v240_v52, %v1536_v2  ;;  %v242_v56 = vmul.f32 %v240_v52, %v1538_v3  ;;  %s1799_s7 = sld [smem:[#allocation2 + $0x45]] }
  0x42   :  { %v183_v57 = vadd.f32 %v182_v6, %v179_v49  ;;  %v184_v58 = vadd.f32 %v182_v6, %v180_v50  ;;  %v252_v60 = vstv %s1645_s11  ;;  %v258_v63 = vstv %s1647_s12  ;;  %s1801_s8 = sld [smem:[#allocation2 + $0x55]] }
  0x43   :  { %v243_v61 = vadd.f32 %v241_v55, %v237_v53  ;;  %v244_v62 = vadd.f32 %v242_v56, %v238_v54  ;;  %v264_v4 = vstv %s1649_s13  ;;  %v270_v10 = vstv %s1659_s14  ;;  %s1811_s9 = sld [smem:[#allocation2 + $0x65]]  ;;  %s1857_s13 = sld [smem:[#allocation2 + $0xc]] }
  0x44   :  { %v185_v5 = vmax.f32 %v183_v57, 0.0  ;;  %v186_v9 = vmax.f32 %v184_v58, 0.0  ;;  %v276_v11 = vstv %s1661_s15  ;;  %v282_v14 = vstv %s1671_s16  ;;  %s1813_s10 = sld [smem:[#allocation2 + $0x75]]  ;;  %s1861_s15 = sld [smem:[#allocation2 + $0x26]] }
  0x45   :  { %v247_v12 = vadd.f32 %v246_v59, %v243_v61  ;;  %v248_v13 = vadd.f32 %v246_v59, %v244_v62  ;;  %v288_v15 = vstv %s1673_s17  ;;  %v294_v55 = vstv %s1709_s18  ;;  %s1823_s1 = sld [smem:[#allocation2 + $0x85]]  ;;  %s1867_s16 = sld [smem:[#allocation2 + $0x36]] }
  0x46   :  { %v189_v16 = vmul.f32 %v188_v7, %v185_v5  ;;  %v190_v6 = vmul.f32 %v188_v7, %v186_v9  ;;  %v195_v25 = vmul.f32 %v194_v8, %v185_v5  ;;  %v196_v26 = vmul.f32 %v194_v8, %v186_v9  ;;  %s1825_s11 = sld [smem:[#allocation2 + $0x95]]  ;;  %s1869_s17 = sld [smem:[#allocation2 + $0x46]] }
  0x47   :  { %v201_v27 = vmul.f32 %v200_v43, %v185_v5  ;;  %v202_v28 = vmul.f32 %v200_v43, %v186_v9  ;;  %v207_v29 = vmul.f32 %v206_v44, %v185_v5  ;;  %v208_v30 = vmul.f32 %v206_v44, %v186_v9  ;;  %s1855_s12 = sld [smem:[#allocation2 + $0xa5]]  ;;  %s1875_s18 = sld [smem:[#allocation2 + $0x56]] }
  0x48   :  { %v191_v31 = vadd.f32 %v189_v16, %v1623_v17  ;;  %v192_v7 = vadd.f32 %v190_v6, %v1625_v18  ;;  %v197_v32 = vadd.f32 %v195_v25, %v1627_v19  ;;  %v198_v8 = vadd.f32 %v196_v26, %v1629_v20  ;;  %s1859_s14 = sld [smem:[#allocation2 + $0xd]] }
  0x49   :  { %v203_v41 = vadd.f32 %v201_v27, %v1635_v21  ;;  %v204_v42 = vadd.f32 %v202_v28, %v1637_v22  ;;  %v209_v43 = vadd.f32 %v207_v29, %v1639_v23  ;;  %v210_v44 = vadd.f32 %v208_v30, %v1641_v24 }
  0x4a   :  { %v213_v49 = vmul.f32 %v212_v45, %v185_v5  ;;  %v214_v50 = vmul.f32 %v212_v45, %v186_v9  ;;  %v219_v51 = vmul.f32 %v218_v46, %v185_v5  ;;  %v220_v52 = vmul.f32 %v218_v46, %v186_v9 }
  0x4b   :  { %v225_v17 = vmul.f32 %v224_v47, %v185_v5  ;;  %v226_v18 = vmul.f32 %v224_v47, %v186_v9  ;;  %v231_v53 = vmul.f32 %v230_v48, %v185_v5  ;;  %v232_v19 = vmul.f32 %v230_v48, %v186_v9 }
  0x4c   :  { %v215_v20 = vadd.f32 %v213_v49, %v1651_v33  ;;  %v216_v21 = vadd.f32 %v214_v50, %v1653_v34  ;;  %v221_v22 = vadd.f32 %v219_v51, %v1655_v35  ;;  %v222_v23 = vadd.f32 %v220_v52, %v1657_v36 }
  0x4d   :  { %v227_v24 = vadd.f32 %v225_v17, %v1663_v37  ;;  %v228_v45 = vadd.f32 %v226_v18, %v1665_v38  ;;  %v233_v46 = vadd.f32 %v231_v53, %v1667_v39  ;;  %v234_v47 = vadd.f32 %v232_v19, %v1669_v40 }
  0x4e   :  { %v249_v54 = vmax.f32 %v247_v12, 0.0  ;;  %v250_v48 = vmax.f32 %v248_v13, 0.0  ;;  %v300_v33 = vstv %s1711_s19  ;;  %v304_v36 = vstv %s1713_s20  ;;  %s1877_s19 = sld [smem:[#allocation2 + $0x66]] }
  0x4f   :  { %v301_v34 = vmul.f32 %v300_v33, %v1528_v0  ;;  %v302_v35 = vmul.f32 %v300_v33, %v1530_v1  ;;  %v310_v37 = vstv %s1715_s21  ;;  %v328_v49 = vstv %s1743_s24  ;;  %s1899_s20 = sld [smem:[#allocation2 + $0x76]] }
  0x50   :  { %v253_v38 = vmul.f32 %v252_v60, %v249_v54  ;;  %v254_v39 = vmul.f32 %v252_v60, %v250_v48  ;;  %v259_v40 = vmul.f32 %v258_v63, %v249_v54  ;;  %v260_v56 = vmul.f32 %v258_v63, %v250_v48  ;;  %s1901_s21 = sld [smem:[#allocation2 + $0x86]] }
  0x51   :  { %v265_v57 = vmul.f32 %v264_v4, %v249_v54  ;;  %v266_v58 = vmul.f32 %v264_v4, %v250_v48  ;;  %v271_v59 = vmul.f32 %v270_v10, %v249_v54  ;;  %v272_v61 = vmul.f32 %v270_v10, %v250_v48  ;;  %s1923_s24 = sld [smem:[#allocation2 + $0xe]] }
  0x52   :  { %v1763_v60 = vadd.f32 %v253_v38, %v191_v31  ;;  %v1765_v62 = vadd.f32 %v254_v39, %v192_v7  ;;  %v1767_v63 = vadd.f32 %v259_v40, %v197_v32  ;;  %v1769_v4 = vadd.f32 %v260_v56, %v198_v8 }
  0x53   :  { %v1775_v5 = vadd.f32 %v265_v57, %v203_v41  ;;  %v1777_v9 = vadd.f32 %v266_v58, %v204_v42  ;;  %v1779_v10 = vadd.f32 %v271_v59, %v209_v43  ;;  %v1781_v12 = vadd.f32 %v272_v61, %v210_v44 }
  0x54   :  { %v277_v13 = vmul.f32 %v276_v11, %v249_v54  ;;  %v278_v16 = vmul.f32 %v276_v11, %v250_v48  ;;  %v283_v6 = vmul.f32 %v282_v14, %v249_v54  ;;  %v284_v25 = vmul.f32 %v282_v14, %v250_v48 }
  0x55   :  { %v289_v26 = vmul.f32 %v288_v15, %v249_v54  ;;  %v290_v27 = vmul.f32 %v288_v15, %v250_v48  ;;  %v295_v28 = vmul.f32 %v294_v55, %v249_v54  ;;  %v296_v29 = vmul.f32 %v294_v55, %v250_v48 }
  0x56   :  { %v1803_v30 = vadd.f32 %v277_v13, %v215_v20  ;;  %v1805_v11 = vadd.f32 %v278_v16, %v216_v21  ;;  %v1807_v31 = vadd.f32 %v283_v6, %v221_v22  ;;  %v1809_v14 = vadd.f32 %v284_v25, %v222_v23 }
  0x57   :  { %v1815_v15 = vadd.f32 %v289_v26, %v227_v24  ;;  %v1817_v7 = vadd.f32 %v290_v27, %v228_v45  ;;  %v1819_v32 = vadd.f32 %v295_v28, %v233_v46  ;;  %v1821_v8 = vadd.f32 %v296_v29, %v234_v47 }
  0x58   :  { %v305_v41 = vmul.f32 %v304_v36, %v1536_v2  ;;  %v306_v42 = vmul.f32 %v304_v36, %v1538_v3  ;;  %v316_v43 = vstv %s1735_s22  ;;  %v322_v44 = vstv %s1737_s23  ;;  %s1911_s22 = sld [smem:[#allocation2 + $0x96]] }
  0x59   :  { %v334_v50 = vstv %s1745_s25  ;;  %v340_v51 = vstv %s1747_s26  ;;  %v346_v52 = vstv %s1749_s27  ;;  %v352_v53 = vstv %s1759_s28  ;;  %s1913_s23 = sld [smem:[#allocation2 + $0xa6]]  ;;  %s1925_s25 = sld [smem:[#allocation2 + $0xf]] }
  0x5a   :  { %v307_v17 = vadd.f32 %v305_v41, %v301_v34  ;;  %v308_v18 = vadd.f32 %v306_v42, %v302_v35  ;;  %v358_v19 = vstv %s1761_s30  ;;  %v364_v20 = vstv %s1771_s3  ;;  %s1943_s26 = sld [smem:[#allocation2 + $0x27]] }
  0x5b   :  { %v368_v21 = vstv %s1773_s4  ;;  %v374_v22 = vstv %s1783_s5  ;;  %v380_v23 = vstv %s1785_s6  ;;  %v365_v46 = vmul.f32 %v364_v20, %v1528_v0  ;;  %s1945_s27 = sld [smem:[#allocation2 + $0x37]] }
  0x5c   :  { %v311_v24 = vadd.f32 %v310_v37, %v307_v17  ;;  %v312_v45 = vadd.f32 %v310_v37, %v308_v18  ;;  %v366_v47 = vmul.f32 %v364_v20, %v1530_v1  ;;  %v369_v54 = vmul.f32 %v368_v21, %v1536_v2  ;;  %s1955_s28 = sld [smem:[#allocation2 + $0x47]] }
  0x5d   :  { %v370_v48 = vmul.f32 %v368_v21, %v1538_v3  ;;  %v386_v55 = vstv %s1799_s7  ;;  %v392_v33 = vstv %s1801_s8  ;;  %v398_v36 = vstv %s1811_s9  ;;  %s1957_s30 = sld [smem:[#allocation2 + $0x57]]  ;;  %s2013_s8 = sld [smem:[#allocation2 + $0x10]] }
  0x5e   :  { %v313_v34 = vmax.f32 %v311_v24, 0.0  ;;  %v314_v35 = vmax.f32 %v312_v45, 0.0  ;;  %v404_v38 = vstv %s1813_s10  ;;  %v371_v39 = vadd.f32 %v369_v54, %v365_v46  ;;  %s1963_s3 = sld [smem:[#allocation2 + $0x67]]  ;;  %s2023_s9 = sld [smem:[#allocation2 + $0x11]] }
  0x5f   :  { %v372_v40 = vadd.f32 %v370_v48, %v366_v47  ;;  %v410_v56 = vstv %s1823_s1  ;;  %v416_v57 = vstv %s1825_s11  ;;  %v422_v21 = vstv %s1855_s12  ;;  %s1965_s4 = sld [smem:[#allocation2 + $0x77]]  ;;  %s2025_s10 = sld [smem:[#allocation2 + $0x28]] }
  0x60   :  { %v317_v58 = vmul.f32 %v316_v43, %v313_v34  ;;  %v318_v37 = vmul.f32 %v316_v43, %v314_v35  ;;  %v323_v59 = vmul.f32 %v322_v44, %v313_v34  ;;  %v324_v61 = vmul.f32 %v322_v44, %v314_v35  ;;  %s1999_s5 = sld [smem:[#allocation2 + $0x87]]  ;;  %s2035_s1 = sld [smem:[#allocation2 + $0x38]] }
  0x61   :  { %v329_v13 = vmul.f32 %v328_v49, %v313_v34  ;;  %v330_v16 = vmul.f32 %v328_v49, %v314_v35  ;;  %v335_v6 = vmul.f32 %v334_v50, %v313_v34  ;;  %v336_v25 = vmul.f32 %v334_v50, %v314_v35  ;;  %s2001_s6 = sld [smem:[#allocation2 + $0x97]]  ;;  %s2037_s11 = sld [smem:[#allocation2 + $0x48]] }
  0x62   :  { %v319_v26 = vadd.f32 %v317_v58, %v1763_v60  ;;  %v320_v27 = vadd.f32 %v318_v37, %v1765_v62  ;;  %v325_v28 = vadd.f32 %v323_v59, %v1767_v63  ;;  %v326_v29 = vadd.f32 %v324_v61, %v1769_v4  ;;  %s2011_s7 = sld [smem:[#allocation2 + $0xa7]]  ;;  %s2059_s12 = sld [smem:[#allocation2 + $0x58]] }
  0x63   :  { %v331_v41 = vadd.f32 %v329_v13, %v1775_v5  ;;  %v332_v42 = vadd.f32 %v330_v16, %v1777_v9  ;;  %v337_v43 = vadd.f32 %v335_v6, %v1779_v10  ;;  %v338_v44 = vadd.f32 %v336_v25, %v1781_v12 }
  0x64   :  { %v341_v60 = vmul.f32 %v340_v51, %v313_v34  ;;  %v342_v62 = vmul.f32 %v340_v51, %v314_v35  ;;  %v347_v63 = vmul.f32 %v346_v52, %v313_v34  ;;  %v348_v4 = vmul.f32 %v346_v52, %v314_v35 }
  0x65   :  { %v353_v49 = vmul.f32 %v352_v53, %v313_v34  ;;  %v354_v50 = vmul.f32 %v352_v53, %v314_v35  ;;  %v359_v17 = vmul.f32 %v358_v19, %v313_v34  ;;  %v360_v5 = vmul.f32 %v358_v19, %v314_v35 }
  0x66   :  { %v343_v9 = vadd.f32 %v341_v60, %v1803_v30  ;;  %v344_v10 = vadd.f32 %v342_v62, %v1805_v11  ;;  %v349_v12 = vadd.f32 %v347_v63, %v1807_v31  ;;  %v350_v18 = vadd.f32 %v348_v4, %v1809_v14 }
  0x67   :  { %v355_v51 = vadd.f32 %v353_v49, %v1815_v15  ;;  %v356_v52 = vadd.f32 %v354_v50, %v1817_v7  ;;  %v361_v53 = vadd.f32 %v359_v17, %v1819_v32  ;;  %v362_v19 = vadd.f32 %v360_v5, %v1821_v8 }
  0x68   :  { %v375_v20 = vadd.f32 %v374_v22, %v371_v39  ;;  %v376_v30 = vadd.f32 %v374_v22, %v372_v40  ;;  %v428_v11 = vstv %s1857_s13  ;;  %v432_v15 = vstv %s1859_s14  ;;  %s2061_s13 = sld [smem:[#allocation2 + $0x68]] }
  0x69   :  { %v429_v31 = vmul.f32 %v428_v11, %v1528_v0  ;;  %v430_v14 = vmul.f32 %v428_v11, %v1530_v1  ;;  %v438_v7 = vstv %s1861_s15  ;;  %v433_v8 = vmul.f32 %v432_v15, %v1536_v2  ;;  %s2071_s14 = sld [smem:[#allocation2 + $0x78]] }
  0x6a   :  { %v377_v24 = vmax.f32 %v375_v20, 0.0  ;;  %v378_v32 = vmax.f32 %v376_v30, 0.0  ;;  %v434_v22 = vmul.f32 %v432_v15, %v1538_v3  ;;  %v444_v45 = vstv %s1867_s16  ;;  %s2073_s15 = sld [smem:[#allocation2 + $0x88]] }
  0x6b   :  { %v450_v46 = vstv %s1869_s17  ;;  %v456_v47 = vstv %s1875_s18  ;;  %v462_v54 = vstv %s1877_s19  ;;  %v435_v49 = vadd.f32 %v433_v8, %v429_v31  ;;  %s2083_s16 = sld [smem:[#allocation2 + $0x98]]  ;;  %s2095_s18 = sld [smem:[#allocation2 + $0x12]] }
  0x6c   :  { %v381_v48 = vmul.f32 %v380_v23, %v377_v24  ;;  %v382_v34 = vmul.f32 %v380_v23, %v378_v32  ;;  %v387_v35 = vmul.f32 %v386_v55, %v377_v24  ;;  %v388_v39 = vmul.f32 %v386_v55, %v378_v32  ;;  %s2085_s17 = sld [smem:[#allocation2 + $0xa8]]  ;;  %s2097_s19 = sld [smem:[#allocation2 + $0x13]] }
  0x6d   :  { %v393_v40 = vmul.f32 %v392_v33, %v377_v24  ;;  %v394_v58 = vmul.f32 %v392_v33, %v378_v32  ;;  %v399_v37 = vmul.f32 %v398_v36, %v377_v24  ;;  %v400_v59 = vmul.f32 %v398_v36, %v378_v32 }
  0x6e   :  { %v1927_v23 = vadd.f32 %v381_v48, %v319_v26  ;;  %v1929_v55 = vadd.f32 %v382_v34, %v320_v27  ;;  %v1931_v61 = vadd.f32 %v387_v35, %v325_v28  ;;  %v1933_v33 = vadd.f32 %v388_v39, %v326_v29 }
  0x6f   :  { %v1935_v13 = vadd.f32 %v393_v40, %v331_v41  ;;  %v1937_v16 = vadd.f32 %v394_v58, %v332_v42  ;;  %v1939_v36 = vadd.f32 %v399_v37, %v337_v43  ;;  %v1941_v6 = vadd.f32 %v400_v59, %v338_v44 }
  0x70   :  { %v405_v25 = vmul.f32 %v404_v38, %v377_v24  ;;  %v406_v26 = vmul.f32 %v404_v38, %v378_v32  ;;  %v411_v27 = vmul.f32 %v410_v56, %v377_v24  ;;  %v412_v28 = vmul.f32 %v410_v56, %v378_v32 }
  0x71   :  { %v417_v29 = vmul.f32 %v416_v57, %v377_v24  ;;  %v418_v41 = vmul.f32 %v416_v57, %v378_v32  ;;  %v423_v42 = vmul.f32 %v422_v21, %v377_v24  ;;  %v424_v43 = vmul.f32 %v422_v21, %v378_v32 }
  0x72   :  { %v1967_v38 = vadd.f32 %v405_v25, %v343_v9  ;;  %v1969_v56 = vadd.f32 %v406_v26, %v344_v10  ;;  %v1971_v44 = vadd.f32 %v411_v27, %v349_v12  ;;  %v1973_v60 = vadd.f32 %v412_v28, %v350_v18 }
  0x73   :  { %v1975_v57 = vadd.f32 %v417_v29, %v355_v51  ;;  %v1977_v62 = vadd.f32 %v418_v41, %v356_v52  ;;  %v1979_v63 = vadd.f32 %v423_v42, %v361_v53  ;;  %v1981_v4 = vadd.f32 %v424_v43, %v362_v19 }
  0x74   :  { %v436_v50 = vadd.f32 %v434_v22, %v430_v14  ;;  %v468_v17 = vstv %s1899_s20  ;;  %v474_v5 = vstv %s1901_s21  ;;  %v480_v9 = vstv %s1911_s22  ;;  %s2111_s20 = sld [smem:[#allocation2 + $0x29]] }
  0x75   :  { %v486_v10 = vstv %s1913_s23  ;;  %v492_v12 = vstv %s1923_s24  ;;  %v496_v18 = vstv %s1925_s25  ;;  %v439_v51 = vadd.f32 %v438_v7, %v435_v49  ;;  %s2113_s21 = sld [smem:[#allocation2 + $0x39]] }
  0x76   :  { %v440_v52 = vadd.f32 %v438_v7, %v436_v50  ;;  %v493_v53 = vmul.f32 %v492_v12, %v1528_v0  ;;  %v494_v19 = vmul.f32 %v492_v12, %v1530_v1  ;;  %v497_v20 = vmul.f32 %v496_v18, %v1536_v2  ;;  %s2115_s22 = sld [smem:[#allocation2 + $0x49]] }
  0x77   :  { %v498_v30 = vmul.f32 %v496_v18, %v1538_v3  ;;  %v502_v21 = vstv %s1943_s26  ;;  %v508_v11 = vstv %s1945_s27  ;;  %v441_v31 = vmax.f32 %v439_v51, 0.0  ;;  %s2117_s23 = sld [smem:[#allocation2 + $0x59]] }
  0x78   :  { %v442_v14 = vmax.f32 %v440_v52, 0.0  ;;  %v514_v15 = vstv %s1955_s28  ;;  %v520_v7 = vstv %s1957_s30  ;;  %v499_v24 = vadd.f32 %v497_v20, %v493_v53  ;;  %s2159_s24 = sld [smem:[#allocation2 + $0x69]]  ;;  %s2177_s30 = sld [smem:[#allocation2 + $0x14]] }
  0x79   :  { %v500_v32 = vadd.f32 %v498_v30, %v494_v19  ;;  %v526_v8 = vstv %s1963_s3  ;;  %v532_v22 = vstv %s1965_s4  ;;  %v445_v48 = vmul.f32 %v444_v45, %v441_v31  ;;  %s2161_s25 = sld [smem:[#allocation2 + $0x79]]  ;;  %s2183_s3 = sld [smem:[#allocation2 + $0x15]] }
  0x7a   :  { %v446_v34 = vmul.f32 %v444_v45, %v442_v14  ;;  %v451_v35 = vmul.f32 %v450_v46, %v441_v31  ;;  %v452_v39 = vmul.f32 %v450_v46, %v442_v14  ;;  %v457_v40 = vmul.f32 %v456_v47, %v441_v31  ;;  %s2171_s26 = sld [smem:[#allocation2 + $0x89]]  ;;  %s2185_s4 = sld [smem:[#allocation2 + $0x2a]] }
  0x7b   :  { %v458_v58 = vmul.f32 %v456_v47, %v442_v14  ;;  %v463_v37 = vmul.f32 %v462_v54, %v441_v31  ;;  %v464_v59 = vmul.f32 %v462_v54, %v442_v14  ;;  %v447_v45 = vadd.f32 %v445_v48, %v1927_v23  ;;  %s2173_s27 = sld [smem:[#allocation2 + $0x99]] }
  0x7c   :  { %v448_v46 = vadd.f32 %v446_v34, %v1929_v55  ;;  %v453_v25 = vadd.f32 %v451_v35, %v1931_v61  ;;  %v454_v26 = vadd.f32 %v452_v39, %v1933_v33  ;;  %v459_v27 = vadd.f32 %v457_v40, %v1935_v13  ;;  %s2175_s28 = sld [smem:[#allocation2 + $0xa9]] }
  0x7d   :  { %v460_v47 = vadd.f32 %v458_v58, %v1937_v16  ;;  %v465_v28 = vadd.f32 %v463_v37, %v1939_v36  ;;  %v466_v54 = vadd.f32 %v464_v59, %v1941_v6  ;;  %v469_v29 = vmul.f32 %v468_v17, %v441_v31 }
  0x7e   :  { %v470_v23 = vmul.f32 %v468_v17, %v442_v14  ;;  %v475_v41 = vmul.f32 %v474_v5, %v441_v31  ;;  %v476_v55 = vmul.f32 %v474_v5, %v442_v14  ;;  %v481_v61 = vmul.f32 %v480_v9, %v441_v31 }
  0x7f   :  { %v482_v33 = vmul.f32 %v480_v9, %v442_v14  ;;  %v487_v13 = vmul.f32 %v486_v10, %v441_v31  ;;  %v488_v16 = vmul.f32 %v486_v10, %v442_v14  ;;  %v471_v36 = vadd.f32 %v469_v29, %v1967_v38 }
  0x80   :  { %v472_v6 = vadd.f32 %v470_v23, %v1969_v56  ;;  %v477_v42 = vadd.f32 %v475_v41, %v1971_v44  ;;  %v478_v43 = vadd.f32 %v476_v55, %v1973_v60  ;;  %v483_v49 = vadd.f32 %v481_v61, %v1975_v57 }
  0x81   :  { %v484_v50 = vadd.f32 %v482_v33, %v1977_v62  ;;  %v489_v17 = vadd.f32 %v487_v13, %v1979_v63  ;;  %v490_v5 = vadd.f32 %v488_v16, %v1981_v4  ;;  %v503_v9 = vadd.f32 %v502_v21, %v499_v24 }
  0x82   :  { %v504_v10 = vadd.f32 %v502_v21, %v500_v32  ;;  %v538_v12 = vstv %s1999_s5  ;;  %v544_v38 = vstv %s2001_s6  ;;  %v550_v56 = vstv %s2011_s7  ;;  %s2191_s5 = sld [smem:[#allocation2 + $0x3a]] }
  0x83   :  { %v556_v44 = vstv %s2013_s8  ;;  %v560_v60 = vstv %s2023_s9  ;;  %v566_v57 = vstv %s2025_s10  ;;  %v505_v18 = vmax.f32 %v503_v9, 0.0  ;;  %v2149_v9 = vld [vmem:[#allocation6 + $0x10] sm:$0xff]  ;;  %s2193_s6 = sld [smem:[#allocation2 + $0x4a]] }
  0x84   :  { %v506_v62 = vmax.f32 %v504_v10, 0.0  ;;  %v557_v63 = vmul.f32 %v556_v44, %v1528_v0  ;;  %v558_v4 = vmul.f32 %v556_v44, %v1530_v1  ;;  %v561_v51 = vmul.f32 %v560_v60, %v1536_v2  ;;  %s2215_s7 = sld [smem:[#allocation2 + $0x5a]] }
  0x85   :  { %v562_v52 = vmul.f32 %v560_v60, %v1538_v3  ;;  %v572_v53 = vstv %s2035_s1  ;;  %v578_v19 = vstv %s2037_s11  ;;  %v509_v20 = vmul.f32 %v508_v11, %v505_v18  ;;  %s2217_s8 = sld [smem:[#allocation2 + $0x6a]] }
  0x86   :  { %v510_v30 = vmul.f32 %v508_v11, %v506_v62  ;;  %v515_v0 = vmul.f32 %v514_v15, %v505_v18  ;;  %v516_v21 = vmul.f32 %v514_v15, %v506_v62  ;;  %v521_v1 = vmul.f32 %v520_v7, %v505_v18  ;;  %s2227_s9 = sld [smem:[#allocation2 + $0x7a]] }
  0x87   :  { %v522_v2 = vmul.f32 %v520_v7, %v506_v62  ;;  %v527_v3 = vmul.f32 %v526_v8, %v505_v18  ;;  %v528_v31 = vmul.f32 %v526_v8, %v506_v62  ;;  %v2087_v11 = vadd.f32 %v509_v20, %v447_v45  ;;  %s2229_s10 = sld [smem:[#allocation2 + $0x8a]] }
  0x88   :  { %v2089_v14 = vadd.f32 %v510_v30, %v448_v46  ;;  %v2091_v15 = vadd.f32 %v515_v0, %v453_v25  ;;  %v2093_v24 = vadd.f32 %v516_v21, %v454_v26  ;;  %v2099_v7 = vadd.f32 %v521_v1, %v459_v27  ;;  %s2235_s1 = sld [smem:[#allocation2 + $0x9a]] }
  0x89   :  { %v2101_v32 = vadd.f32 %v522_v2, %v460_v47  ;;  %v2103_v8 = vadd.f32 %v527_v3, %v465_v28  ;;  %v2105_v48 = vadd.f32 %v528_v31, %v466_v54  ;;  %v533_v34 = vmul.f32 %v532_v22, %v505_v18  ;;  %s2237_s11 = sld [smem:[#allocation2 + $0xaa]] }
  0x8a   :  { %v534_v35 = vmul.f32 %v532_v22, %v506_v62  ;;  %v539_v39 = vmul.f32 %v538_v12, %v505_v18  ;;  %v540_v40 = vmul.f32 %v538_v12, %v506_v62  ;;  %v545_v58 = vmul.f32 %v544_v38, %v505_v18  ;;  %v2152_v12 = vld [vmem:[#allocation6 + $0x18] sm:$0xff] }
  0x8b   :  { %v546_v37 = vmul.f32 %v544_v38, %v506_v62  ;;  %v551_v59 = vmul.f32 %v550_v56, %v505_v18  ;;  %v552_v45 = vmul.f32 %v550_v56, %v506_v62  ;;  %v2119_v22 = vadd.f32 %v533_v34, %v471_v36 }
  0x8c   :  { %v2121_v46 = vadd.f32 %v534_v35, %v472_v6  ;;  %v2123_v25 = vadd.f32 %v539_v39, %v477_v42  ;;  %v2125_v26 = vadd.f32 %v540_v40, %v478_v43  ;;  %v2127_v27 = vadd.f32 %v545_v58, %v483_v49  ;;  %v2143_v49 = vld [vmem:[#allocation6] sm:$0xff] }
  0x8d   :  { %v2129_v47 = vadd.f32 %v546_v37, %v484_v50  ;;  %v2131_v28 = vadd.f32 %v551_v59, %v489_v17  ;;  %v2133_v54 = vadd.f32 %v552_v45, %v490_v5  ;;  %v563_v29 = vadd.f32 %v561_v51, %v557_v63  ;;  %v2146_v17 = vld [vmem:[#allocation6 + $0x8] sm:$0xff] }
  0x8e   :  { %v564_v23 = vadd.f32 %v562_v52, %v558_v4  ;;  %v584_v41 = vstv %s2059_s12  ;;  %v590_v55 = vstv %s2061_s13  ;;  %v596_v61 = vstv %s2071_s14  ;;  %s2247_s12 = sld [smem:[#allocation2 + $0x16]]  ;;  %s2249_s13 = sld [smem:[#allocation2 + $0x17]] }
  0x8f   :  { %v602_v33 = vstv %s2073_s15  ;;  %v608_v13 = vstv %s2083_s16  ;;  %v614_v16 = vstv %s2085_s17  ;;  %v567_v36 = vadd.f32 %v566_v57, %v563_v29  ;;  %s2259_s14 = sld [smem:[#allocation2 + $0x2b]] }
  0x90   :  { %v568_v6 = vadd.f32 %v566_v57, %v564_v23  ;;  %v620_v42 = vstv %s2095_s18  ;;  %v624_v43 = vstv %s2097_s19  ;;  %v630_v60 = vstv %s2111_s20  ;;  %s2261_s15 = sld [smem:[#allocation2 + $0x3b]] }
  0x91   :  { %v621_v50 = vmul.f32 %v2143_v49, %v620_v42  ;;  %v622_v5 = vmul.f32 %v2146_v17, %v620_v42  ;;  %v625_v10 = vmul.f32 %v2149_v9, %v624_v43  ;;  %v626_v38 = vmul.f32 %v2152_v12, %v624_v43  ;;  %s2263_s16 = sld [smem:[#allocation2 + $0x4b]] }
  0x92   :  { %v569_v56 = vmax.f32 %v567_v36, 0.0  ;;  %v570_v44 = vmax.f32 %v568_v6, 0.0  ;;  %v636_v57 = vstv %s2113_s21  ;;  %v642_v63 = vstv %s2115_s22  ;;  %s2265_s17 = sld [smem:[#allocation2 + $0x5b]] }
  0x93   :  { %v627_v18 = vadd.f32 %v625_v10, %v621_v50  ;;  %v628_v62 = vadd.f32 %v626_v38, %v622_v5  ;;  %v648_v4 = vstv %s2117_s23  ;;  %v688_v36 = vstv %s2183_s3  ;;  %s2275_s18 = sld [smem:[#allocation2 + $0x6b]]  ;;  %s2327_s23 = sld [smem:[#allocation2 + $0x18]] }
  0x94   :  { %v573_v51 = vmul.f32 %v572_v53, %v569_v56  ;;  %v574_v52 = vmul.f32 %v572_v53, %v570_v44  ;;  %v579_v20 = vmul.f32 %v578_v19, %v569_v56  ;;  %v580_v30 = vmul.f32 %v578_v19, %v570_v44  ;;  %s2277_s19 = sld [smem:[#allocation2 + $0x7b]]  ;;  %s2363_s3 = sld [smem:[#allocation2 + $0x7c]] }
  0x95   :  { %v585_v0 = vmul.f32 %v584_v41, %v569_v56  ;;  %v586_v21 = vmul.f32 %v584_v41, %v570_v44  ;;  %v591_v1 = vmul.f32 %v590_v55, %v569_v56  ;;  %v592_v2 = vmul.f32 %v590_v55, %v570_v44  ;;  %s2287_s20 = sld [smem:[#allocation2 + $0x8b]] }
  0x96   :  { %v575_v3 = vadd.f32 %v573_v51, %v2087_v11  ;;  %v576_v53 = vadd.f32 %v574_v52, %v2089_v14  ;;  %v581_v31 = vadd.f32 %v579_v20, %v2091_v15  ;;  %v582_v19 = vadd.f32 %v580_v30, %v2093_v24  ;;  %s2289_s21 = sld [smem:[#allocation2 + $0x9b]] }
  0x97   :  { %v587_v34 = vadd.f32 %v585_v0, %v2099_v7  ;;  %v588_v35 = vadd.f32 %v586_v21, %v2101_v32  ;;  %v593_v39 = vadd.f32 %v591_v1, %v2103_v8  ;;  %v594_v40 = vadd.f32 %v592_v2, %v2105_v48  ;;  %s2325_s22 = sld [smem:[#allocation2 + $0xab]] }
  0x98   :  { %v597_v11 = vmul.f32 %v596_v61, %v569_v56  ;;  %v598_v14 = vmul.f32 %v596_v61, %v570_v44  ;;  %v603_v15 = vmul.f32 %v602_v33, %v569_v56  ;;  %v604_v24 = vmul.f32 %v602_v33, %v570_v44 }
  0x99   :  { %v609_v58 = vmul.f32 %v608_v13, %v569_v56  ;;  %v610_v37 = vmul.f32 %v608_v13, %v570_v44  ;;  %v615_v7 = vmul.f32 %v614_v16, %v569_v56  ;;  %v616_v32 = vmul.f32 %v614_v16, %v570_v44 }
  0x9a   :  { %v599_v8 = vadd.f32 %v597_v11, %v2119_v22  ;;  %v600_v48 = vadd.f32 %v598_v14, %v2121_v46  ;;  %v605_v59 = vadd.f32 %v603_v15, %v2123_v25  ;;  %v606_v45 = vadd.f32 %v604_v24, %v2125_v26 }
  0x9b   :  { %v611_v29 = vadd.f32 %v609_v58, %v2127_v27  ;;  %v612_v23 = vadd.f32 %v610_v37, %v2129_v47  ;;  %v617_v41 = vadd.f32 %v615_v7, %v2131_v28  ;;  %v618_v55 = vadd.f32 %v616_v32, %v2133_v54 }
  0x9c   :  { %v631_v61 = vadd.f32 %v630_v60, %v627_v18  ;;  %v632_v22 = vadd.f32 %v630_v60, %v628_v62  ;;  %v654_v33 = vstv %s2159_s24  ;;  %v660_v46 = vstv %s2161_s25  ;;  %s2329_s24 = sld [smem:[#allocation2 + $0x19]]  ;;  %s2331_s25 = sld [smem:[#allocation2 + $0x2c]] }
  0x9d   :  { %v666_v25 = vstv %s2171_s26  ;;  %v672_v26 = vstv %s2173_s27  ;;  %v678_v27 = vstv %s2175_s28  ;;  %v684_v13 = vstv %s2177_s30  ;;  %s2351_s26 = sld [smem:[#allocation2 + $0x3c]] }
  0x9e   :  { %v633_v47 = vmax.f32 %v631_v61, 0.0  ;;  %v634_v16 = vmax.f32 %v632_v22, 0.0  ;;  %v685_v28 = vmul.f32 %v2143_v49, %v684_v13  ;;  %v686_v54 = vmul.f32 %v2146_v17, %v684_v13  ;;  %s2353_s27 = sld [smem:[#allocation2 + $0x4c]] }
  0x9f   :  { %v694_v6 = vstv %s2185_s4  ;;  %v700_v42 = vstv %s2191_s5  ;;  %v706_v43 = vstv %s2193_s6  ;;  %v689_v58 = vmul.f32 %v2149_v9, %v688_v36  ;;  %s2359_s28 = sld [smem:[#allocation2 + $0x5c]] }
  0xa0   :  { %v637_v50 = vmul.f32 %v636_v57, %v633_v47  ;;  %v638_v5 = vmul.f32 %v636_v57, %v634_v16  ;;  %v643_v10 = vmul.f32 %v642_v63, %v633_v47  ;;  %v644_v38 = vmul.f32 %v642_v63, %v634_v16  ;;  %s2361_s30 = sld [smem:[#allocation2 + $0x6c]] }
  0xa1   :  { %v649_v56 = vmul.f32 %v648_v4, %v633_v47  ;;  %v650_v44 = vmul.f32 %v648_v4, %v634_v16  ;;  %v655_v60 = vmul.f32 %v654_v33, %v633_v47  ;;  %v656_v18 = vmul.f32 %v654_v33, %v634_v16  ;;  %s2365_s4 = sld [smem:[#allocation2 + $0x8c]] }
  0xa2   :  { %v2239_v62 = vadd.f32 %v637_v50, %v575_v3  ;;  %v2241_v57 = vadd.f32 %v638_v5, %v576_v53  ;;  %v2243_v51 = vadd.f32 %v643_v10, %v581_v31  ;;  %v2245_v63 = vadd.f32 %v644_v38, %v582_v19  ;;  %s2375_s5 = sld [smem:[#allocation2 + $0x9c]] }
  0xa3   :  { %v2251_v52 = vadd.f32 %v649_v56, %v587_v34  ;;  %v2253_v4 = vadd.f32 %v650_v44, %v588_v35  ;;  %v2255_v20 = vadd.f32 %v655_v60, %v593_v39  ;;  %v2257_v30 = vadd.f32 %v656_v18, %v594_v40  ;;  %s2377_s6 = sld [smem:[#allocation2 + $0xac]] }
  0xa4   :  { %v661_v0 = vmul.f32 %v660_v46, %v633_v47  ;;  %v662_v21 = vmul.f32 %v660_v46, %v634_v16  ;;  %v667_v1 = vmul.f32 %v666_v25, %v633_v47  ;;  %v668_v2 = vmul.f32 %v666_v25, %v634_v16 }
  0xa5   :  { %v673_v3 = vmul.f32 %v672_v26, %v633_v47  ;;  %v674_v53 = vmul.f32 %v672_v26, %v634_v16  ;;  %v679_v31 = vmul.f32 %v678_v27, %v633_v47  ;;  %v680_v19 = vmul.f32 %v678_v27, %v634_v16 }
  0xa6   :  { %v2267_v34 = vadd.f32 %v661_v0, %v599_v8  ;;  %v2269_v35 = vadd.f32 %v662_v21, %v600_v48  ;;  %v2271_v39 = vadd.f32 %v667_v1, %v605_v59  ;;  %v2273_v40 = vadd.f32 %v668_v2, %v606_v45 }
  0xa7   :  { %v2279_v11 = vadd.f32 %v673_v3, %v611_v29  ;;  %v2281_v14 = vadd.f32 %v674_v53, %v612_v23  ;;  %v2283_v15 = vadd.f32 %v679_v31, %v617_v41  ;;  %v2285_v24 = vadd.f32 %v680_v19, %v618_v55 }
  0xa8   :  { %v690_v37 = vmul.f32 %v2152_v12, %v688_v36  ;;  %v712_v7 = vstv %s2215_s7  ;;  %v718_v32 = vstv %s2217_s8  ;;  %v724_v8 = vstv %s2227_s9  ;;  %s2387_s7 = sld [smem:[#allocation2 + $0x1a]]  ;;  %s2389_s8 = sld [smem:[#allocation2 + $0x1b]] }
  0xa9   :  { %v730_v48 = vstv %s2229_s10  ;;  %v736_v59 = vstv %s2235_s1  ;;  %v742_v45 = vstv %s2237_s11  ;;  %v691_v29 = vadd.f32 %v689_v58, %v685_v28  ;;  %s2399_s9 = sld [smem:[#allocation2 + $0x2d]] }
  0xaa   :  { %v692_v23 = vadd.f32 %v690_v37, %v686_v54  ;;  %v748_v41 = vstv %s2247_s12  ;;  %v752_v55 = vstv %s2249_s13  ;;  %v758_v27 = vstv %s2259_s14  ;;  %s2401_s10 = sld [smem:[#allocation2 + $0x3d]] }
  0xab   :  { %v749_v61 = vmul.f32 %v2143_v49, %v748_v41  ;;  %v750_v22 = vmul.f32 %v2146_v17, %v748_v41  ;;  %v753_v33 = vmul.f32 %v2149_v9, %v752_v55  ;;  %v754_v46 = vmul.f32 %v2152_v12, %v752_v55  ;;  %s2415_s1 = sld [smem:[#allocation2 + $0x4d]] }
  0xac   :  { %v695_v25 = vadd.f32 %v694_v6, %v691_v29  ;;  %v696_v26 = vadd.f32 %v694_v6, %v692_v23  ;;  %v764_v13 = vstv %s2261_s15  ;;  %v770_v28 = vstv %s2263_s16  ;;  %s2417_s11 = sld [smem:[#allocation2 + $0x5d]] }
  0xad   :  { %v755_v47 = vadd.f32 %v753_v33, %v749_v61  ;;  %v756_v16 = vadd.f32 %v754_v46, %v750_v22  ;;  %v776_v54 = vstv %s2265_s17  ;;  %v782_v5 = vstv %s2275_s18  ;;  %s2427_s12 = sld [smem:[#allocation2 + $0x6d]]  ;;  %s2473_s17 = sld [smem:[#allocation2 + $0x1c]] }
  0xae   :  { %v697_v36 = vmax.f32 %v695_v25, 0.0  ;;  %v698_v50 = vmax.f32 %v696_v26, 0.0  ;;  %v788_v10 = vstv %s2277_s19  ;;  %v794_v44 = vstv %s2287_s20  ;;  %s2429_s13 = sld [smem:[#allocation2 + $0x7d]]  ;;  %s2477_s19 = sld [smem:[#allocation2 + $0x2e]] }
  0xaf   :  { %v759_v38 = vadd.f32 %v758_v27, %v755_v47  ;;  %v760_v56 = vadd.f32 %v758_v27, %v756_v16  ;;  %v800_v60 = vstv %s2289_s21  ;;  %v806_v33 = vstv %s2325_s22  ;;  %s2439_s14 = sld [smem:[#allocation2 + $0x8d]]  ;;  %s2483_s20 = sld [smem:[#allocation2 + $0x3e]] }
  0xb0   :  { %v701_v18 = vmul.f32 %v700_v42, %v697_v36  ;;  %v702_v6 = vmul.f32 %v700_v42, %v698_v50  ;;  %v707_v0 = vmul.f32 %v706_v43, %v697_v36  ;;  %v708_v21 = vmul.f32 %v706_v43, %v698_v50  ;;  %s2441_s15 = sld [smem:[#allocation2 + $0x9d]]  ;;  %s2485_s21 = sld [smem:[#allocation2 + $0x4e]] }
  0xb1   :  { %v713_v1 = vmul.f32 %v712_v7, %v697_v36  ;;  %v714_v2 = vmul.f32 %v712_v7, %v698_v50  ;;  %v719_v3 = vmul.f32 %v718_v32, %v697_v36  ;;  %v720_v53 = vmul.f32 %v718_v32, %v698_v50  ;;  %s2471_s16 = sld [smem:[#allocation2 + $0xad]]  ;;  %s2491_s22 = sld [smem:[#allocation2 + $0x5e]] }
  0xb2   :  { %v703_v31 = vadd.f32 %v701_v18, %v2239_v62  ;;  %v704_v42 = vadd.f32 %v702_v6, %v2241_v57  ;;  %v709_v19 = vadd.f32 %v707_v0, %v2243_v51  ;;  %v710_v43 = vadd.f32 %v708_v21, %v2245_v63  ;;  %s2475_s18 = sld [smem:[#allocation2 + $0x1d]] }
  0xb3   :  { %v715_v58 = vadd.f32 %v713_v1, %v2251_v52  ;;  %v716_v37 = vadd.f32 %v714_v2, %v2253_v4  ;;  %v721_v7 = vadd.f32 %v719_v3, %v2255_v20  ;;  %v722_v32 = vadd.f32 %v720_v53, %v2257_v30 }
  0xb4   :  { %v725_v29 = vmul.f32 %v724_v8, %v697_v36  ;;  %v726_v23 = vmul.f32 %v724_v8, %v698_v50  ;;  %v731_v41 = vmul.f32 %v730_v48, %v697_v36  ;;  %v732_v55 = vmul.f32 %v730_v48, %v698_v50 }
  0xb5   :  { %v737_v62 = vmul.f32 %v736_v59, %v697_v36  ;;  %v738_v57 = vmul.f32 %v736_v59, %v698_v50  ;;  %v743_v61 = vmul.f32 %v742_v45, %v697_v36  ;;  %v744_v51 = vmul.f32 %v742_v45, %v698_v50 }
  0xb6   :  { %v727_v63 = vadd.f32 %v725_v29, %v2267_v34  ;;  %v728_v52 = vadd.f32 %v726_v23, %v2269_v35  ;;  %v733_v4 = vadd.f32 %v731_v41, %v2271_v39  ;;  %v734_v20 = vadd.f32 %v732_v55, %v2273_v40 }
  0xb7   :  { %v739_v30 = vadd.f32 %v737_v62, %v2279_v11  ;;  %v740_v8 = vadd.f32 %v738_v57, %v2281_v14  ;;  %v745_v48 = vadd.f32 %v743_v61, %v2283_v15  ;;  %v746_v59 = vadd.f32 %v744_v51, %v2285_v24 }
  0xb8   :  { %v761_v22 = vmax.f32 %v759_v38, 0.0  ;;  %v762_v45 = vmax.f32 %v760_v56, 0.0  ;;  %v812_v34 = vstv %s2327_s23  ;;  %v816_v40 = vstv %s2329_s24  ;;  %s2493_s23 = sld [smem:[#allocation2 + $0x6e]] }
  0xb9   :  { %v813_v35 = vmul.f32 %v2143_v49, %v812_v34  ;;  %v814_v39 = vmul.f32 %v2146_v17, %v812_v34  ;;  %v822_v11 = vstv %s2331_s25  ;;  %v840_v29 = vstv %s2359_s28  ;;  %s2515_s24 = sld [smem:[#allocation2 + $0x7e]] }
  0xba   :  { %v765_v14 = vmul.f32 %v764_v13, %v761_v22  ;;  %v766_v15 = vmul.f32 %v764_v13, %v762_v45  ;;  %v771_v24 = vmul.f32 %v770_v28, %v761_v22  ;;  %v772_v46 = vmul.f32 %v770_v28, %v762_v45  ;;  %s2517_s25 = sld [smem:[#allocation2 + $0x8e]] }
  0xbb   :  { %v777_v25 = vmul.f32 %v776_v54, %v761_v22  ;;  %v778_v26 = vmul.f32 %v776_v54, %v762_v45  ;;  %v783_v27 = vmul.f32 %v782_v5, %v761_v22  ;;  %v784_v47 = vmul.f32 %v782_v5, %v762_v45  ;;  %s2539_s28 = sld [smem:[#allocation2 + $0x1e]] }
  0xbc   :  { %v2379_v13 = vadd.f32 %v765_v14, %v703_v31  ;;  %v2381_v16 = vadd.f32 %v766_v15, %v704_v42  ;;  %v2383_v28 = vadd.f32 %v771_v24, %v709_v19  ;;  %v2385_v54 = vadd.f32 %v772_v46, %v710_v43 }
  0xbd   :  { %v2391_v36 = vadd.f32 %v777_v25, %v715_v58  ;;  %v2393_v50 = vadd.f32 %v778_v26, %v716_v37  ;;  %v2395_v5 = vadd.f32 %v783_v27, %v721_v7  ;;  %v2397_v38 = vadd.f32 %v784_v47, %v722_v32 }
  0xbe   :  { %v789_v56 = vmul.f32 %v788_v10, %v761_v22  ;;  %v790_v18 = vmul.f32 %v788_v10, %v762_v45  ;;  %v795_v6 = vmul.f32 %v794_v44, %v761_v22  ;;  %v796_v0 = vmul.f32 %v794_v44, %v762_v45 }
  0xbf   :  { %v801_v21 = vmul.f32 %v800_v60, %v761_v22  ;;  %v802_v1 = vmul.f32 %v800_v60, %v762_v45  ;;  %v807_v2 = vmul.f32 %v806_v33, %v761_v22  ;;  %v808_v3 = vmul.f32 %v806_v33, %v762_v45 }
  0xc0   :  { %v2419_v53 = vadd.f32 %v789_v56, %v727_v63  ;;  %v2421_v10 = vadd.f32 %v790_v18, %v728_v52  ;;  %v2423_v31 = vadd.f32 %v795_v6, %v733_v4  ;;  %v2425_v44 = vadd.f32 %v796_v0, %v734_v20 }
  0xc1   :  { %v2431_v60 = vadd.f32 %v801_v21, %v739_v30  ;;  %v2433_v42 = vadd.f32 %v802_v1, %v740_v8  ;;  %v2435_v19 = vadd.f32 %v807_v2, %v745_v48  ;;  %v2437_v43 = vadd.f32 %v808_v3, %v746_v59 }
  0xc2   :  { %v817_v58 = vmul.f32 %v2149_v9, %v816_v40  ;;  %v818_v37 = vmul.f32 %v2152_v12, %v816_v40  ;;  %v828_v7 = vstv %s2351_s26  ;;  %v834_v32 = vstv %s2353_s27  ;;  %s2527_s26 = sld [smem:[#allocation2 + $0x9e]] }
  0xc3   :  { %v846_v23 = vstv %s2361_s30  ;;  %v852_v41 = vstv %s2363_s3  ;;  %v858_v55 = vstv %s2365_s4  ;;  %v864_v61 = vstv %s2375_s5  ;;  %s2529_s27 = sld [smem:[#allocation2 + $0xae]]  ;;  %s2541_s30 = sld [smem:[#allocation2 + $0x1f]] }
  0xc4   :  { %v819_v62 = vadd.f32 %v817_v58, %v813_v35  ;;  %v820_v57 = vadd.f32 %v818_v37, %v814_v39  ;;  %v870_v51 = vstv %s2377_s6  ;;  %v876_v63 = vstv %s2387_s7  ;;  %s2559_s3 = sld [smem:[#allocation2 + $0x2f]] }
  0xc5   :  { %v880_v52 = vstv %s2389_s8  ;;  %v886_v4 = vstv %s2399_s9  ;;  %v892_v20 = vstv %s2401_s10  ;;  %v877_v48 = vmul.f32 %v2143_v49, %v876_v63  ;;  %s2561_s4 = sld [smem:[#allocation2 + $0x3f]] }
  0xc6   :  { %v823_v30 = vadd.f32 %v822_v11, %v819_v62  ;;  %v824_v8 = vadd.f32 %v822_v11, %v820_v57  ;;  %v878_v59 = vmul.f32 %v2146_v17, %v876_v63  ;;  %v881_v22 = vmul.f32 %v2149_v9, %v880_v52  ;;  %s2571_s5 = sld [smem:[#allocation2 + $0x4f]] }
  0xc7   :  { %v882_v45 = vmul.f32 %v2152_v12, %v880_v52  ;;  %v898_v33 = vstv %s2415_s1  ;;  %v904_v34 = vstv %s2417_s11  ;;  %v910_v40 = vstv %s2427_s12  ;;  %s2573_s6 = sld [smem:[#allocation2 + $0x5f]]  ;;  %s2621_s11 = sld [smem:[#allocation2 + $0xb0]] }
  0xc8   :  { %v825_v35 = vmax.f32 %v823_v30, 0.0  ;;  %v826_v39 = vmax.f32 %v824_v8, 0.0  ;;  %v916_v14 = vstv %s2429_s13  ;;  %v883_v15 = vadd.f32 %v881_v22, %v877_v48  ;;  %s2579_s7 = sld [smem:[#allocation2 + $0x6f]]  ;;  %s2631_s12 = sld [smem:[#allocation2 + $0xb8]] }
  0xc9   :  { %v884_v24 = vadd.f32 %v882_v45, %v878_v59  ;;  %v922_v46 = vstv %s2439_s14  ;;  %v928_v25 = vstv %s2441_s15  ;;  %v934_v52 = vstv %s2471_s16  ;;  %s2581_s8 = sld [smem:[#allocation2 + $0x7f]]  ;;  %s2633_s13 = sld [smem:[#allocation2 + $0xb1]] }
  0xca   :  { %v829_v26 = vmul.f32 %v828_v7, %v825_v35  ;;  %v830_v11 = vmul.f32 %v828_v7, %v826_v39  ;;  %v835_v27 = vmul.f32 %v834_v32, %v825_v35  ;;  %v836_v47 = vmul.f32 %v834_v32, %v826_v39  ;;  %s2613_s9 = sld [smem:[#allocation2 + $0x8f]]  ;;  %s2643_s14 = sld [smem:[#allocation2 + $0xb9]] }
  0xcb   :  { %v841_v56 = vmul.f32 %v840_v29, %v825_v35  ;;  %v842_v18 = vmul.f32 %v840_v29, %v826_v39  ;;  %v847_v6 = vmul.f32 %v846_v23, %v825_v35  ;;  %v848_v0 = vmul.f32 %v846_v23, %v826_v39  ;;  %s2615_s10 = sld [smem:[#allocation2 + $0x9f]]  ;;  %s2645_s15 = sld [smem:[#allocation2 + $0xb2]] }
  0xcc   :  { %v831_v21 = vadd.f32 %v829_v26, %v2379_v13  ;;  %v832_v1 = vadd.f32 %v830_v11, %v2381_v16  ;;  %v837_v2 = vadd.f32 %v835_v27, %v2383_v28  ;;  %v838_v3 = vadd.f32 %v836_v47, %v2385_v54  ;;  %s2619_s1 = sld [smem:[#allocation2 + $0xaf]]  ;;  %s2651_s16 = sld [smem:[#allocation2 + $0xba]] }
  0xcd   :  { %v843_v58 = vadd.f32 %v841_v56, %v2391_v36  ;;  %v844_v37 = vadd.f32 %v842_v18, %v2393_v50  ;;  %v849_v7 = vadd.f32 %v847_v6, %v2395_v5  ;;  %v850_v32 = vadd.f32 %v848_v0, %v2397_v38 }
  0xce   :  { %v853_v13 = vmul.f32 %v852_v41, %v825_v35  ;;  %v854_v16 = vmul.f32 %v852_v41, %v826_v39  ;;  %v859_v28 = vmul.f32 %v858_v55, %v825_v35  ;;  %v860_v54 = vmul.f32 %v858_v55, %v826_v39 }
  0xcf   :  { %v865_v29 = vmul.f32 %v864_v61, %v825_v35  ;;  %v866_v23 = vmul.f32 %v864_v61, %v826_v39  ;;  %v871_v62 = vmul.f32 %v870_v51, %v825_v35  ;;  %v872_v36 = vmul.f32 %v870_v51, %v826_v39 }
  0xd0   :  { %v855_v50 = vadd.f32 %v853_v13, %v2419_v53  ;;  %v856_v5 = vadd.f32 %v854_v16, %v2421_v10  ;;  %v861_v38 = vadd.f32 %v859_v28, %v2423_v31  ;;  %v862_v57 = vadd.f32 %v860_v54, %v2425_v44 }
  0xd1   :  { %v867_v41 = vadd.f32 %v865_v29, %v2431_v60  ;;  %v868_v55 = vadd.f32 %v866_v23, %v2433_v42  ;;  %v873_v61 = vadd.f32 %v871_v62, %v2435_v19  ;;  %v874_v51 = vadd.f32 %v872_v36, %v2437_v43 }
  0xd2   :  { %v887_v63 = vadd.f32 %v886_v4, %v883_v15  ;;  %v888_v53 = vadd.f32 %v886_v4, %v884_v24  ;;  %v940_v10 = vstv %s2473_s17  ;;  %v944_v60 = vstv %s2475_s18  ;;  %s2653_s17 = sld [smem:[#allocation2 + $0xb3]] }
  0xd3   :  { %v941_v31 = vmul.f32 %v2143_v49, %v940_v10  ;;  %v942_v44 = vmul.f32 %v2146_v17, %v940_v10  ;;  %v950_v42 = vstv %s2477_s19  ;;  %v945_v43 = vmul.f32 %v2149_v9, %v944_v60  ;;  %s2659_s18 = sld [smem:[#allocation2 + $0xbb]]  ;;  %s2661_s19 = sld [smem:[#allocation2 + $0xb4]] }
  0xd4   :  { %v889_v30 = vmax.f32 %v887_v63, 0.0  ;;  %v890_v19 = vmax.f32 %v888_v53, 0.0  ;;  %v946_v4 = vmul.f32 %v2152_v12, %v944_v60  ;;  %v956_v8 = vstv %s2483_s20  ;;  %s2703_s20 = sld [smem:[#allocation2 + $0xbc]] }
  0xd5   :  { %v962_v48 = vstv %s2485_s21  ;;  %v968_v59 = vstv %s2491_s22  ;;  %v974_v22 = vstv %s2493_s23  ;;  %v947_v29 = vadd.f32 %v945_v43, %v941_v31  ;;  %s2705_s21 = sld [smem:[#allocation2 + $0xb5]]  ;;  %s2713_s23 = sld [smem:[#allocation2 + $0xb6]] }
  0xd6   :  { %v893_v45 = vmul.f32 %v892_v20, %v889_v30  ;;  %v894_v35 = vmul.f32 %v892_v20, %v890_v19  ;;  %v899_v39 = vmul.f32 %v898_v33, %v889_v30  ;;  %v900_v15 = vmul.f32 %v898_v33, %v890_v19  ;;  %s2711_s22 = sld [smem:[#allocation2 + $0xbd]] }
  0xd7   :  { %v905_v24 = vmul.f32 %v904_v34, %v889_v30  ;;  %v906_v26 = vmul.f32 %v904_v34, %v890_v19  ;;  %v911_v11 = vmul.f32 %v910_v40, %v889_v30  ;;  %v912_v27 = vmul.f32 %v910_v40, %v890_v19 }
  0xd8   :  { %v2543_v20 = vadd.f32 %v893_v45, %v831_v21  ;;  %v2545_v33 = vadd.f32 %v894_v35, %v832_v1  ;;  %v2547_v47 = vadd.f32 %v899_v39, %v837_v2  ;;  %v2549_v34 = vadd.f32 %v900_v15, %v838_v3 }
  0xd9   :  { %v2551_v56 = vadd.f32 %v905_v24, %v843_v58  ;;  %v2553_v18 = vadd.f32 %v906_v26, %v844_v37  ;;  %v2555_v40 = vadd.f32 %v911_v11, %v849_v7  ;;  %v2557_v6 = vadd.f32 %v912_v27, %v850_v32 }
  0xda   :  { %v917_v0 = vmul.f32 %v916_v14, %v889_v30  ;;  %v918_v21 = vmul.f32 %v916_v14, %v890_v19  ;;  %v923_v1 = vmul.f32 %v922_v46, %v889_v30  ;;  %v924_v2 = vmul.f32 %v922_v46, %v890_v19 }
  0xdb   :  { %v929_v3 = vmul.f32 %v928_v25, %v889_v30  ;;  %v930_v58 = vmul.f32 %v928_v25, %v890_v19  ;;  %v935_v37 = vmul.f32 %v934_v52, %v889_v30  ;;  %v936_v7 = vmul.f32 %v934_v52, %v890_v19 }
  0xdc   :  { %v2583_v14 = vadd.f32 %v917_v0, %v855_v50  ;;  %v2585_v46 = vadd.f32 %v918_v21, %v856_v5  ;;  %v2587_v32 = vadd.f32 %v923_v1, %v861_v38  ;;  %v2589_v13 = vadd.f32 %v924_v2, %v862_v57 }
  0xdd   :  { %v2591_v25 = vadd.f32 %v929_v3, %v867_v41  ;;  %v2593_v16 = vadd.f32 %v930_v58, %v868_v55  ;;  %v2595_v28 = vadd.f32 %v935_v37, %v873_v61  ;;  %v2597_v54 = vadd.f32 %v936_v7, %v874_v51 }
  0xde   :  { %v948_v23 = vadd.f32 %v946_v4, %v942_v44  ;;  %v980_v62 = vstv %s2515_s24  ;;  %v986_v36 = vstv %s2517_s25  ;;  %v992_v50 = vstv %s2527_s26  ;;  %s2719_s24 = sld [smem:[#allocation2 + $0xbe]]  ;;  %s2721_s25 = sld [smem:[#allocation2 + $0xb7]] }
  0xdf   :  { %v998_v5 = vstv %s2529_s27  ;;  %v1004_v38 = vstv %s2539_s28  ;;  %v1008_v57 = vstv %s2541_s30  ;;  %v951_v41 = vadd.f32 %v950_v42, %v947_v29  ;;  %s2739_s26 = sld [smem:[#allocation2 + $0xbf]]  ;;  %s1391_s27 = sld [smem:[#allocation2 + $0xc0]] }
  0xe0   :  { %v952_v55 = vadd.f32 %v950_v42, %v948_v23  ;;  %v1005_v61 = vmul.f32 %v2143_v49, %v1004_v38  ;;  %v1006_v51 = vmul.f32 %v2146_v17, %v1004_v38  ;;  %v1009_v63 = vmul.f32 %v2149_v9, %v1008_v57  ;;  %s1475_s28 = smov [#allocation7]  }
  0xe1   :  { %v1010_v53 = vmul.f32 %v2152_v12, %v1008_v57  ;;  %v1014_v52 = vstv %s2559_s3  ;;  %v1020_v10 = vstv %s2561_s4  ;;  %v953_v31 = vmax.f32 %v951_v41, 0.0  ;;  %s1186_s30 = sshll.u32 %s1475_s28, 4  ;;  %s1187_s30 = int_to_ptr.vmem [resolvable:$true] %s1186_s30 }
  0xe2   :  { %v954_v44 = vmax.f32 %v952_v55, 0.0  ;;  %v1026_v60 = vstv %s2571_s5  ;;  %v1032_v42 = vstv %s2573_s6  ;;  %v1011_v49 = vadd.f32 %v1009_v63, %v1005_v61  ;;  %s1443_s3 = scalar_lea.vmem %s1187_s30, 256  ;;  %p1448_p12 = scmp.lt.s32.totalorder %s1187_s30, %s1187_s30 }
  0xe3   :  { %v1012_v17 = vadd.f32 %v1010_v53, %v1006_v51  ;;  %v1038_v9 = vstv %s2579_s7  ;;  %v1044_v12 = vstv %s2581_s8  ;;  %v957_v30 = vmul.f32 %v956_v8, %v953_v31  ;;  %p1444_p11 = scmp.ne.s32.totalorder %s1187_s30, %s1443_s3  ;;  %p1449_p13 = scmp.lt.s32.totalorder %s1443_s3, %s1443_s3 }
  0xe4   :  { %v958_v19 = vmul.f32 %v956_v8, %v954_v44  ;;  %v963_v43 = vmul.f32 %v962_v48, %v953_v31  ;;  %v964_v4 = vmul.f32 %v962_v48, %v954_v44  ;;  %v969_v45 = vmul.f32 %v968_v59, %v953_v31 }
  0xe5   :  { %v970_v35 = vmul.f32 %v968_v59, %v954_v44  ;;  %v975_v39 = vmul.f32 %v974_v22, %v953_v31  ;;  %v976_v15 = vmul.f32 %v974_v22, %v954_v44  ;;  %v959_v8 = vadd.f32 %v957_v30, %v2543_v20  ;;  %p1450_p0 = por %p1449_p13, %p1448_p12 }
  0xe6   :  { %v960_v48 = vadd.f32 %v958_v19, %v2545_v33  ;;  %v965_v24 = vadd.f32 %v963_v43, %v2547_v47  ;;  %v966_v26 = vadd.f32 %v964_v4, %v2549_v34  ;;  %v971_v59 = vadd.f32 %v969_v45, %v2551_v56 }
  0xe7   :  { %v972_v22 = vadd.f32 %v970_v35, %v2553_v18  ;;  %v977_v11 = vadd.f32 %v975_v39, %v2555_v40  ;;  %v978_v27 = vadd.f32 %v976_v15, %v2557_v6  ;;  %v981_v20 = vmul.f32 %v980_v62, %v953_v31  ;;  %p1451_p1 = pnand %p1450_p0, %p1444_p11 }
  0xe8   :  { %v982_v33 = vmul.f32 %v980_v62, %v954_v44  ;;  %v987_v47 = vmul.f32 %v986_v36, %v953_v31  ;;  %v988_v34 = vmul.f32 %v986_v36, %v954_v44  ;;  %v993_v0 = vmul.f32 %v992_v50, %v953_v31 }
  0xe9   :  { %v994_v21 = vmul.f32 %v992_v50, %v954_v44  ;;  %v999_v56 = vmul.f32 %v998_v5, %v953_v31  ;;  %v1000_v18 = vmul.f32 %v998_v5, %v954_v44  ;;  %v983_v40 = vadd.f32 %v981_v20, %v2583_v14 }
  0xea   :  { %v984_v6 = vadd.f32 %v982_v33, %v2585_v46  ;;  %v989_v1 = vadd.f32 %v987_v47, %v2587_v32  ;;  %v990_v2 = vadd.f32 %v988_v34, %v2589_v13  ;;  %v995_v3 = vadd.f32 %v993_v0, %v2591_v25 }
  0xeb   :  { %v996_v58 = vadd.f32 %v994_v21, %v2593_v16  ;;  %v1001_v37 = vadd.f32 %v999_v56, %v2595_v28  ;;  %v1002_v7 = vadd.f32 %v1000_v18, %v2597_v54  ;;  %v1015_v14 = vadd.f32 %v1014_v52, %v1011_v49 }
  0xec   :  { %v1016_v46 = vadd.f32 %v1014_v52, %v1012_v17  ;;  %v1050_v32 = vstv %s2613_s9  ;;  %v1056_v13 = vstv %s2615_s10  ;;  %v1062_v29 = vstv %s2619_s1 }
  0xed   :  { %v1068_v25 = vstv %s2621_s11  ;;  %v1074_v16 = vstv %s2631_s12  ;;  %v1080_v23 = vstv %s2633_s13  ;;  %v1017_v28 = vmax.f32 %v1015_v14, 0.0 }
  0xee   :  { %v1018_v62 = vmax.f32 %v1016_v46, 0.0  ;;  %v1086_v54 = vstv %s2643_s14  ;;  %v1092_v36 = vstv %s2645_s15  ;;  %v1098_v50 = vstv %s2651_s16 }
  0xef   :  { %v1104_v5 = vstv %s2653_s17  ;;  %v1110_v38 = vstv %s2659_s18  ;;  %v1116_v57 = vstv %s2661_s19  ;;  %v1021_v41 = vmul.f32 %v1020_v10, %v1017_v28 }
  0xf0   :  { %v1022_v55 = vmul.f32 %v1020_v10, %v1018_v62  ;;  %v1027_v61 = vmul.f32 %v1026_v60, %v1017_v28  ;;  %v1028_v51 = vmul.f32 %v1026_v60, %v1018_v62  ;;  %v1033_v63 = vmul.f32 %v1032_v42, %v1017_v28 }
  0xf1   :  { %v1034_v53 = vmul.f32 %v1032_v42, %v1018_v62  ;;  %v1039_v52 = vmul.f32 %v1038_v9, %v1017_v28  ;;  %v1040_v31 = vmul.f32 %v1038_v9, %v1018_v62  ;;  %v1023_v44 = vadd.f32 %v1021_v41, %v959_v8 }
  0xf2   :  { %v1024_v49 = vadd.f32 %v1022_v55, %v960_v48  ;;  %v1029_v17 = vadd.f32 %v1027_v61, %v965_v24  ;;  %v1030_v30 = vadd.f32 %v1028_v51, %v966_v26  ;;  %v1035_v19 = vadd.f32 %v1033_v63, %v971_v59 }
  0xf3   :  { %v1036_v43 = vadd.f32 %v1034_v53, %v972_v22  ;;  %v1041_v10 = vadd.f32 %v1039_v52, %v977_v11  ;;  %v1042_v4 = vadd.f32 %v1040_v31, %v978_v27  ;;  %v1045_v45 = vmul.f32 %v1044_v12, %v1017_v28 }
  0xf4   :  { %v1046_v60 = vmul.f32 %v1044_v12, %v1018_v62  ;;  %v1051_v35 = vmul.f32 %v1050_v32, %v1017_v28  ;;  %v1052_v39 = vmul.f32 %v1050_v32, %v1018_v62  ;;  %v1057_v15 = vmul.f32 %v1056_v13, %v1017_v28 }
  0xf5   :  { %v1058_v42 = vmul.f32 %v1056_v13, %v1018_v62  ;;  %v1063_v20 = vmul.f32 %v1062_v29, %v1017_v28  ;;  %v1064_v33 = vmul.f32 %v1062_v29, %v1018_v62  ;;  %v1047_v47 = vadd.f32 %v1045_v45, %v983_v40 }
  0xf6   :  { %v1048_v9 = vadd.f32 %v1046_v60, %v984_v6  ;;  %v1053_v8 = vadd.f32 %v1051_v35, %v989_v1  ;;  %v1054_v48 = vadd.f32 %v1052_v39, %v990_v2  ;;  %v1059_v24 = vadd.f32 %v1057_v15, %v995_v3 }
  0xf7   :  { %v1060_v26 = vadd.f32 %v1058_v42, %v996_v58  ;;  %v2707_v59 = vadd.f32 %v1063_v20, %v1001_v37  ;;  %v2709_v22 = vadd.f32 %v1064_v33, %v1002_v7  ;;  %v1069_v12 = vadd.f32 %v1068_v25, %v1023_v44 }
  0xf8   :  { %v1070_v11 = vadd.f32 %v1068_v25, %v1024_v49  ;;  %v1081_v27 = vadd.f32 %v1080_v23, %v1029_v17  ;;  %v1082_v34 = vadd.f32 %v1080_v23, %v1030_v30  ;;  %v1093_v0 = vadd.f32 %v1092_v36, %v1035_v19 }
  0xf9   :  { %v1094_v21 = vadd.f32 %v1092_v36, %v1036_v43  ;;  %v1105_v56 = vadd.f32 %v1104_v5, %v1041_v10  ;;  %v1106_v18 = vadd.f32 %v1104_v5, %v1042_v4  ;;  %v1071_v40 = vmax.f32 %v1069_v12, 0.0 }
  0xfa   :  { %v1072_v6 = vmax.f32 %v1070_v11, 0.0  ;;  %v1083_v1 = vmax.f32 %v1081_v27, 0.0  ;;  %v1084_v2 = vmax.f32 %v1082_v34, 0.0  ;;  %v1095_v3 = vmax.f32 %v1093_v0, 0.0 }
  0xfb   :  { %v1096_v58 = vmax.f32 %v1094_v21, 0.0  ;;  %v1107_v37 = vmax.f32 %v1105_v56, 0.0  ;;  %v1108_v7 = vmax.f32 %v1106_v18, 0.0  ;;  %v1075_v14 = vmul.f32 %v1074_v16, %v1071_v40 }
  0xfc   :  { %v1076_v46 = vmul.f32 %v1074_v16, %v1072_v6  ;;  %v1087_v32 = vmul.f32 %v1086_v54, %v1083_v1  ;;  %v1088_v13 = vmul.f32 %v1086_v54, %v1084_v2  ;;  %v1099_v29 = vmul.f32 %v1098_v50, %v1095_v3 }
  0xfd   :  { %v1100_v25 = vmul.f32 %v1098_v50, %v1096_v58  ;;  %v1111_v23 = vmul.f32 %v1110_v38, %v1107_v37  ;;  %v1112_v28 = vmul.f32 %v1110_v38, %v1108_v7  ;;  %v1117_v5 = vadd.f32 %v1116_v57, %v1047_v47 }
  0xfe   :  { %v1089_v62 = vadd.f32 %v1087_v32, %v1075_v14  ;;  %v1090_v36 = vadd.f32 %v1088_v13, %v1076_v46  ;;  %v1118_v16 = vadd.f32 %v1116_v57, %v1048_v9  ;;  %v1122_v41 = vstv %s2703_s20 }
  0xff   :  { %v1128_v54 = vstv %s2705_s21  ;;  %v1134_v55 = vstv %s2711_s22  ;;  %v1140_v61 = vstv %s2713_s23  ;;  %v1119_v53 = vmax.f32 %v1117_v5, 0.0 }
 0x100   :  { %v1101_v51 = vadd.f32 %v1099_v29, %v1089_v62  ;;  %v1102_v63 = vadd.f32 %v1100_v25, %v1090_v36  ;;  %v1120_v50 = vmax.f32 %v1118_v16, 0.0  ;;  %v1129_v52 = vadd.f32 %v1128_v54, %v1053_v8 }
 0x101   :  { %v1130_v38 = vadd.f32 %v1128_v54, %v1054_v48  ;;  %v1141_v31 = vadd.f32 %v1140_v61, %v1059_v24  ;;  %v1142_v44 = vadd.f32 %v1140_v61, %v1060_v26  ;;  %v1123_v30 = vmul.f32 %v1122_v41, %v1119_v53 }
 0x102   :  { %v1113_v49 = vadd.f32 %v1111_v23, %v1101_v51  ;;  %v1114_v17 = vadd.f32 %v1112_v28, %v1102_v63  ;;  %v1124_v57 = vmul.f32 %v1122_v41, %v1120_v50  ;;  %v1131_v19 = vmax.f32 %v1129_v52, 0.0 }
 0x103   :  { %v1132_v43 = vmax.f32 %v1130_v38, 0.0  ;;  %v1143_v10 = vmax.f32 %v1141_v31, 0.0  ;;  %v1144_v4 = vmax.f32 %v1142_v44, 0.0  ;;  %v1146_v35 = vstv %s2719_s24 }
 0x104   :  { %v1125_v45 = vadd.f32 %v1123_v30, %v1113_v49  ;;  %v1126_v60 = vadd.f32 %v1124_v57, %v1114_v17  ;;  %v1152_v39 = vstv %s2721_s25  ;;  %v1135_v15 = vmul.f32 %v1134_v55, %v1131_v19 }
 0x105   :  { %v1136_v42 = vmul.f32 %v1134_v55, %v1132_v43  ;;  %v1147_v20 = vmul.f32 %v1146_v35, %v1143_v10  ;;  %v1148_v33 = vmul.f32 %v1146_v35, %v1144_v4  ;;  %v1153_v47 = vadd.f32 %v1152_v39, %v2707_v59 }
 0x106   :  { %v1154_v9 = vadd.f32 %v1152_v39, %v2709_v22  ;;  %v1137_v8 = vadd.f32 %v1135_v15, %v1125_v45  ;;  %v1158_v24 = vstv %s2739_s26  ;;  %v1164_v21 = vstv %s1391_s27 }
 0x107   :  { %v1138_v48 = vadd.f32 %v1136_v42, %v1126_v60  ;;  %v1155_v26 = vmax.f32 %v1153_v47, 0.0 }
 0x108   :  { %v1156_v12 = vmax.f32 %v1154_v9, 0.0  ;;  %v1149_v11 = vadd.f32 %v1147_v20, %v1137_v8 }
 0x109   :  { %v1150_v27 = vadd.f32 %v1148_v33, %v1138_v48  ;;  %v1159_v34 = vmul.f32 %v1158_v24, %v1155_v26 }
 0x10a   :  { %v1160_v0 = vmul.f32 %v1158_v24, %v1156_v12 }
 0x10b   :  { %v1161_v56 = vadd.f32 %v1159_v34, %v1149_v11 }
 0x10c   :  { %v1162_v18 = vadd.f32 %v1160_v0, %v1150_v27 }
 0x10d   :  { %v1165_v40 = vadd.f32 %v1164_v21, %v1161_v56 }
 0x10e   :  { %v1166_v6 = vadd.f32 %v1164_v21, %v1162_v18 }
 0x10f   :  { %v1392_v1 = vmul.f32 -1.442695, %v1165_v40 }
 0x110   :  { %v1393_v2 = vmul.f32 -1.442695, %v1166_v6 }
 0x111   :  { %1399 = vpow2.f32 %v1392_v1 }
 0x112   :  { %1401 = vpow2.f32 %v1393_v2 }
 0x11b   :  { %v1400_v59 = vpop.eup %1399 }
 0x11c   :  { %v1402_v22 = vpop.eup %1401  ;;  %v1173_v3 = vadd.f32 1.0, %v1400_v59 }
 0x11d   :  { %v1174_v58 = vadd.f32 1.0, %v1402_v22 }
 0x11e   :  { %1403 = vrcp.f32 %v1173_v3 }
 0x11f   :  { %1405 = vrcp.f32 %v1174_v58 }
 0x128   :  { %v1404_v37 = vpop.eup %1403 }
 0x129   :  { %v1406_v7 = vpop.eup %1405  ;;  %1179 = vst [vmem:[#allocation7] sm:$0xff] %v1404_v37 }
 0x12a   :  { %1180 = vst [vmem:[#allocation7 + $0x8] sm:$0xff] %v1406_v7 }
 0x12b   :  { %1454 = shalt.err (!%p1451_p1)
}
 0x12c   :  { %s1455_s6 = scalar_lea.hbm %s2763_s2, 256 }
 0x12d   :  { %p1456_p2 = scmp.ne.s32.totalorder %s2763_s2, %s1455_s6  ;;  %p1459_p3 = scmp.lt.u32.totalorder %s1455_s6, %s2763_s2 }
 0x12f   :  { %p1461_p4 = pnand %p1459_p3, %p1456_p2 }
 0x131   :  { %1464 = shalt.err (!%p1461_p4)
}
 0x132   :  { %1192 = dma.vmem_to_hbm [thread:$0]  %s1187_s30, 256, %s2763_s2, [#allocation4], %s1473_s0, %s1473_s0, %s1474_s29  }
 0x133   :  { %1469 = dma.done.wait [#allocation4], 256  }
 0x134   :  { %1470 = vsyncadd [#allocation4], 4294967040 }
 0x135   :  { %1196 = vsyncpa [#allocation3], 1 }
 0x136   :  { %1197 = vsyncpa [#allocation4], 1 }
 0x137   :  { %1198 = vsyncpa [#allocation5], 1 }

</bundles_post_ra>
